<compile_context>
chip_gen: v7x
topology: tpu7x:2x2x1
jax: 0.10.0
libtpu: 0.0.40
codegen_flags: <defaults>
</compile_context>

<pallas_src>
import numpy as np
import jax
import jax.numpy as jnp
from jax.experimental import pallas as pl
from jax.experimental.pallas import tpu as pltpu

N_PTS = 256                      # number of evaluation points
D_IN = 2                         # spatial input dimension
H = 32                           # hidden width of the EDNN MLP
N_BLOCKS = D_IN + 2              # Jacobian lane blocks: dW1 cols, db1, dW2
N_CORE = N_BLOCKS * H            # 128 non-b2 parameters (lane-dense)
N_PARAMS = N_CORE + 1            # 129 flat parameters (incl. b2)
N_AUG = 2 * N_CORE               # 256 augmented lanes fed to the MXU
LANE_ONE = N_CORE                # global lane of the dU/db2 == 1 column (128)
LANE_UT = N_CORE + 1             # global lane of the u_t column (129)
AUX_ROWS = 8                     # sublane-aligned slab for the padded RHS vector
ROWS_PER_STEP = 64               # point-dim chunk per grid step (vreg-pressure control)


# ----------------------------- Pallas kernel --------------------------------

def ednn_rhs_kernel(x_ref, pmat_ref, cmask_ref, minit_ref, m_ref, a_ref, acc_ref):
    """Fused MLP forward + analytic Jacobian + padded normal equations.

    Inputs (VMEM):
      x_ref     : (ROWS, D_IN)       chunk of evaluation points
      pmat_ref  : (8, N_CORE)        rows 0..3 = [W1 col0, W1 col1, b1, w2] each
                                     tiled N_BLOCKS x along lanes; row 4 lane 0 = b2
      cmask_ref : (8, N_CORE)        rows 0..3 = Jacobian block one-hot masks,
                                     row 4 = marker for global lane 128 (db2 col),
                                     row 5 = marker for global lane 129 (u_t col)
      minit_ref : (N_AUG, N_AUG)     identity tail (1.0 on diag for i >= 129)
    Outputs:
      m_ref     : (N_AUG, N_AUG)     padded normal matrix: M_full in [0:129,0:129],
                                     exact identity elsewhere on the diagonal
      a_ref     : (AUX_ROWS, N_AUG)  row 0 = padded RHS [J^T u_t | sum(u_t) | 0...]
    Scratch:
      acc_ref   : (N_AUG, N_AUG) f32 Gram accumulator across point chunks
    """
    step = pl.program_id(0)
    last = pl.num_programs(0) - 1

    # Seed the accumulator with the identity tail; A^T A only ever touches the
    # [0:130, 0:130] block, so the tail survives untouched until finalize.
    @pl.when(step == 0)
    def _init():
        acc_ref[...] = minit_ref[...]

    x = x_ref[...]                                   # (rows, D_IN)
    rows = x.shape[0]
    pm = pmat_ref[...]                               # (8, N_CORE)
    cm = cmask_ref[...]                              # (8, N_CORE)

    w1_rows = [pm[j:j + 1, :] for j in range(D_IN)]  # tiled W1 columns
    b1_r = pm[D_IN:D_IN + 1, :]
    w2_r = pm[D_IN + 1:D_IN + 2, :]
    b2_r = pm[D_IN + 2:D_IN + 3, 0:1]                # (1, 1) output bias
    masks = [cm[j:j + 1, :] for j in range(N_BLOCKS)]
    one_hi = cm[N_BLOCKS:N_BLOCKS + 1, :]            # 1.0 at local lane 0 (global 128)
    ut_hi = cm[N_BLOCKS + 1:N_BLOCKS + 2, :]         # 1.0 at local lane 1 (global 129)

    # Hoisted lane-broadcasts of the coordinates, shared by the forward pass and
    # the Jacobian x-factor (JAX does not CSE broadcast_in_dim).
    xb = [jnp.broadcast_to(x[:, j:j + 1], (rows, N_CORE)) for j in range(D_IN)]

    # --- MLP forward on VPU/EUP (hidden dim replicated N_BLOCKS x along lanes) ---
    pre = b1_r
    xmix = masks[D_IN]                # Jacobian x-factor: 1.0 on the db1 block
    for j in range(D_IN):
        pre = pre + xb[j] * w1_rows[j]
        xmix = xmix + xb[j] * masks[j]   # x_j on the dW1[:, j] block
    h = jnp.tanh(pre)                                        # (rows, N_CORE)
    u = jnp.sum(h * w2_r, axis=-1, keepdims=True) * (1.0 / N_BLOCKS) + b2_r
    u_t = -u                                                 # equation(u, x) = -u
    # TODO(synk): equations needing spatial derivatives of u (autograd w.r.t. x)
    #             are not kernelized.

    # --- Parameter Jacobian in its final lane layout (host-built block masks) ---
    g = (1.0 - h * h) * w2_r
    j_lo = g * xmix + h * masks[D_IN + 1]                    # (rows, 128)
    # Augmented lanes: 128 -> dU/db2 == 1, 129 -> u_t, 130.. -> 0, so the single
    # MXU matmul below also yields the b2 row/col of M, J^T u_t, N and sum(u_t).
    a_hi = one_hi + u_t * ut_hi                              # (rows, 128)
    a_aug = jnp.concatenate([j_lo, a_hi], axis=1)            # (rows, 256)

    # A^T A with contraction over the point dim of both operands (same form as the
    # flash-attention bwd dK/dV matmuls; avoids materializing a transposed operand).
    acc_ref[...] += jax.lax.dot_general(
        a_aug, a_aug, (((0,), (0,)), ((), ())),
        preferred_element_type=jnp.float32)

    @pl.when(step == last)
    def _finalize():
        e_ut = minit_ref[LANE_UT:LANE_UT + 1, :]   # unit row e_129 (from tail identity)
        col_keep = 1.0 - e_ut                      # kills column 129 (u_t cross terms)
        a_row = acc_ref[LANE_UT:LANE_UT + 1, :] * col_keep   # [J^T u_t | sum u_t | 0..]
        m_ref[...] = acc_ref[...] * col_keep       # padded M, column 129 zeroed
        m_ref[LANE_UT:LANE_UT + 1, :] = e_ut       # row 129 := exact identity row
        a_ref[...] = jnp.zeros((AUX_ROWS, N_AUG), jnp.float32)
        a_ref[0:1, :] = a_row


# ------------------------------ host-side prep ------------------------------

def _build_static_operands():
    lane = np.arange(N_CORE)
    blk = lane // H
    cmask = np.zeros((8, N_CORE), np.float32)
    for j in range(N_BLOCKS):
        cmask[j, :] = (blk == j)
    cmask[N_BLOCKS, 0] = 1.0        # marker for global lane 128 (dU/db2 column)
    cmask[N_BLOCKS + 1, 1] = 1.0    # marker for global lane 129 (u_t column)
    minit = np.zeros((N_AUG, N_AUG), np.float32)
    tail = np.arange(LANE_UT, N_AUG)
    minit[tail, tail] = 1.0         # exact identity tail of the padded normal matrix
    return jnp.asarray(cmask), jnp.asarray(minit)


_CMASK, _MINIT = _build_static_operands()


def _prep_param_operands(params):
    """Flat params -> lane-tiled hidden-layer matrix (b2 packed into row 4, lane 0).

    Flat layout (matches the MLP's segment_params): [W1 col-major (D_IN blocks of H),
    b1 (H), w2 (H), b2 (1)].
    """
    core = params[:N_CORE].reshape(N_BLOCKS, H).astype(jnp.float32)
    tiled = jnp.tile(core, (1, N_BLOCKS))                           # (4, 128)
    b2_row = jnp.zeros((1, N_CORE), jnp.float32).at[0, 0].set(
        params[N_CORE].astype(jnp.float32))
    pad = jnp.zeros((8 - N_BLOCKS - 1, N_CORE), jnp.float32)
    return jnp.concatenate([tiled, b2_row, pad], axis=0)            # (8, 128)


def _fused_normal_eq_call(x_eval, pmat):
    n_pts = x_eval.shape[0]
    assert n_pts % ROWS_PER_STEP == 0
    grid = (n_pts // ROWS_PER_STEP,)
    return pl.pallas_call(
        ednn_rhs_kernel,
        out_shape=(jax.ShapeDtypeStruct((N_AUG, N_AUG), jnp.float32),
                   jax.ShapeDtypeStruct((AUX_ROWS, N_AUG), jnp.float32)),
        grid_spec=pltpu.PrefetchScalarGridSpec(
            num_scalar_prefetch=0,
            grid=grid,
            in_specs=[
                pl.BlockSpec((ROWS_PER_STEP, D_IN), lambda i: (i, 0)),
                pl.BlockSpec((8, N_CORE), lambda i: (0, 0)),
                pl.BlockSpec((8, N_CORE), lambda i: (0, 0)),
                pl.BlockSpec((N_AUG, N_AUG), lambda i: (0, 0)),
            ],
            out_specs=(pl.BlockSpec((N_AUG, N_AUG), lambda i: (0, 0)),
                       pl.BlockSpec((AUX_ROWS, N_AUG), lambda i: (0, 0))),
            scratch_shapes=[pltpu.VMEM((N_AUG, N_AUG), jnp.float32)],
        ),
        compiler_params=pltpu.CompilerParams(
            dimension_semantics=("arbitrary",)),   # point chunks accumulate sequentially
    )(x_eval, pmat, _CMASK, _MINIT)


def normal_system(state, x_eval):
    """Padded normal equations: M_pad (256,256, identity tail) and a_pad (8,256)."""
    params = state.reshape(-1)
    pmat = _prep_param_operands(params)
    return _fused_normal_eq_call(x_eval.astype(jnp.float32), pmat)


def ednn_trainer_forward(t, state, x_eval):
    """EDNNTrainer.forward(t, state): ODE right-hand side for the flat params."""
    del t  # TODO(synk): restart/retraining (Adam loop) & nfe/logging are host control flow.
    m_pad, aux = normal_system(state, x_eval)
    a_pad = aux[0]
    # method == 'optimization', reg == 0 -> deriv = solve(M, a); solved on the padded
    # block-diagonal system (exact identity tail, zero RHS tail) so the misaligned
    # 129-shaped concatenates/pads never materialize before the solve.
    # TODO(synk): dense LU solve has no clean Pallas equivalent; left to jnp.linalg.solve.
    deriv_pad = jnp.linalg.solve(m_pad, a_pad)
    return deriv_pad[:N_PARAMS].reshape(1, -1)      # matches state shape (1, n_params)


# Pure-JAX reference (self-check of the fused kernel's normal equations).
def _mlp_ref(params, x):
    w1t = params[:D_IN * H].reshape(D_IN, H)
    b1 = params[D_IN * H:D_IN * H + H]
    w2 = params[D_IN * H + H:D_IN * H + 2 * H]
    b2 = params[-1]
    h = jnp.tanh(x @ w1t + b1)
    return h @ w2 + b2


if __name__ == "__main__":
    key = jax.random.PRNGKey(0)
    kx, k1, k2, k3, k4 = jax.random.split(key, 5)

    x_eval = jax.random.normal(kx, (N_PTS, D_IN), jnp.float32)

    # Deterministic parameter init (shapes implied by the EDNN MLP: D_IN -> H -> 1).
    W1 = 0.5 * jax.random.normal(k1, (H, D_IN), jnp.float32)
    B1 = 0.1 * jax.random.normal(k2, (H,), jnp.float32)
    W2 = 0.5 * jax.random.normal(k3, (H,), jnp.float32)
    B2 = 0.1 * jax.random.normal(k4, (1,), jnp.float32)
    params = jnp.concatenate([W1.T.reshape(-1), B1, W2, B2])   # documented flat layout
    state = params.reshape(1, -1)                              # (1, N_PARAMS)
    t = jnp.array(0.0, jnp.float32)

    # Self-check vs pure-JAX autodiff reference (HIGHEST-precision host matmuls).
    u_ref = _mlp_ref(params, x_eval)
    J_ref = jax.jacrev(_mlp_ref)(params, x_eval)               # (N_PTS, N_PARAMS)
    hi = jax.lax.Precision.HIGHEST
    M_ref = jnp.matmul(J_ref.T, J_ref, precision=hi)
    a_ref = jnp.matmul(J_ref.T, -u_ref, precision=hi)

    m_pad, aux = jax.jit(normal_system)(state, x_eval)
    a_pad = aux[0]
    M_k = m_pad[:N_PARAMS, :N_PARAMS]
    a_k = a_pad[:N_PARAMS]
    rel_m = float(jnp.linalg.norm(M_k - M_ref) / jnp.linalg.norm(M_ref))
    rel_a = float(jnp.linalg.norm(a_k - a_ref) / jnp.linalg.norm(a_ref))
    # Tolerance tightened 20x vs the previous 2e-2.  1e-3 is robust to either an
    # f32 multi-pass or a single-pass-bf16 MXU lowering of the in-kernel f32
    # dot_general; pin it to 1e-5 once the lowered pass count is verified on the
    # target Mosaic version (bundle-dump check).
    assert rel_m < 1e-3, f"M mismatch: rel err {rel_m}"
    assert rel_a < 1e-3, f"a mismatch: rel err {rel_a}"

    # Structural check of the padded system (exact identity tail, zero couplings,
    # zero RHS tail) — guarantees the padded solve equals the 129x129 solve.
    eye_tail = jnp.eye(N_AUG, dtype=jnp.float32)[N_PARAMS:, :]
    assert float(jnp.abs(m_pad[N_PARAMS:, :] - eye_tail).max()) < 1e-6
    assert float(jnp.abs(m_pad[:N_PARAMS, N_PARAMS:]).max()) < 1e-6
    assert float(jnp.abs(a_pad[N_PARAMS:]).max()) < 1e-6

    deriv = jax.jit(ednn_trainer_forward)(t, state, x_eval)
    deriv = jax.block_until_ready(deriv)
    assert deriv.shape == (1, N_PARAMS)
    print("KERNEL_OK")
</pallas_src>

<mosaic_0001>
module attributes {stable_mosaic.version = 11 : i64} {
  func.func @ednn_rhs_kernel(%arg0: i32, %arg1: memref<64x2xf32, #tpu.memory_space<vmem>>, %arg2: memref<8x128xf32, #tpu.memory_space<vmem>>, %arg3: memref<8x128xf32, #tpu.memory_space<vmem>>, %arg4: memref<256x256xf32, #tpu.memory_space<vmem>>, %arg5: memref<256x256xf32, #tpu.memory_space<vmem>>, %arg6: memref<8x256xf32, #tpu.memory_space<vmem>>, %arg7: memref<256x256xf32, #tpu.memory_space<vmem>>) attributes {dimension_semantics = [#tpu.dimension_semantics<arbitrary>], iteration_bounds = array<i64: 4>, scalar_prefetch = 0 : i64, scratch_operands = 1 : i64, tpu.core_type = #tpu.core_type<tc>, window_params = [{transform_indices = @transform_0, window_bounds = array<i64: 64, 2>}, {pipeline_mode = #tpu.pipeline_mode<synchronous>, transform_indices = @transform_1, window_bounds = array<i64: 8, 128>}, {pipeline_mode = #tpu.pipeline_mode<synchronous>, transform_indices = @transform_2, window_bounds = array<i64: 8, 128>}, {pipeline_mode = #tpu.pipeline_mode<synchronous>, transform_indices = @transform_3, window_bounds = array<i64: 256, 256>}, {pipeline_mode = #tpu.pipeline_mode<synchronous>, transform_indices = @transform_4, window_bounds = array<i64: 256, 256>}, {pipeline_mode = #tpu.pipeline_mode<synchronous>, transform_indices = @transform_5, window_bounds = array<i64: 8, 256>}]} {
    %c0_i32 = arith.constant 0 : i32
    %0 = arith.cmpi eq, %arg0, %c0_i32 : i32
    %1 = arith.extui %0 : i1 to i32
    %c0_i32_0 = arith.constant 0 : i32
    %2 = arith.cmpi ne, %1, %c0_i32_0 : i32
    scf.if %2 {
      %c0_15 = arith.constant 0 : index
      %c0_16 = arith.constant 0 : index
      %70 = vector.load %arg4[%c0_15, %c0_16] : memref<256x256xf32, #tpu.memory_space<vmem>>, vector<256x256xf32>
      %c0_17 = arith.constant 0 : index
      %c0_18 = arith.constant 0 : index
      %71 = vector.load %arg7[%c0_17, %c0_18] : memref<256x256xf32, #tpu.memory_space<vmem>>, vector<256x256xf32>
      tpu.vector_store %arg7[%c0_17, %c0_18], %70 {strides = array<i32>} : memref<256x256xf32, #tpu.memory_space<vmem>>, vector<256x256xf32>,
    } else {
    }
    %c0 = arith.constant 0 : index
    %c0_1 = arith.constant 0 : index
    %3 = vector.load %arg1[%c0, %c0_1] : memref<64x2xf32, #tpu.memory_space<vmem>>, vector<64x2xf32>
    %c0_2 = arith.constant 0 : index
    %c0_3 = arith.constant 0 : index
    %4 = vector.load %arg2[%c0_2, %c0_3] : memref<8x128xf32, #tpu.memory_space<vmem>>, vector<8x128xf32>
    %c0_4 = arith.constant 0 : index
    %c0_5 = arith.constant 0 : index
    %5 = vector.load %arg3[%c0_4, %c0_5] : memref<8x128xf32, #tpu.memory_space<vmem>>, vector<8x128xf32>
    %6 = vector.extract_strided_slice %4 {offsets = [0, 0], sizes = [1, 128], strides = [1, 1]} : vector<8x128xf32> to vector<1x128xf32>
    %7 = vector.extract_strided_slice %4 {offsets = [1, 0], sizes = [1, 128], strides = [1, 1]} : vector<8x128xf32> to vector<1x128xf32>
    %8 = vector.extract_strided_slice %4 {offsets = [2, 0], sizes = [1, 128], strides = [1, 1]} : vector<8x128xf32> to vector<1x128xf32>
    %9 = vector.extract_strided_slice %4 {offsets = [3, 0], sizes = [1, 128], strides = [1, 1]} : vector<8x128xf32> to vector<1x128xf32>
    %10 = vector.extract_strided_slice %4 {offsets = [4, 0], sizes = [1, 1], strides = [1, 1]} : vector<8x128xf32> to vector<1x1xf32>
    %11 = vector.extract_strided_slice %5 {offsets = [0, 0], sizes = [1, 128], strides = [1, 1]} : vector<8x128xf32> to vector<1x128xf32>
    %12 = vector.extract_strided_slice %5 {offsets = [1, 0], sizes = [1, 128], strides = [1, 1]} : vector<8x128xf32> to vector<1x128xf32>
    %13 = vector.extract_strided_slice %5 {offsets = [2, 0], sizes = [1, 128], strides = [1, 1]} : vector<8x128xf32> to vector<1x128xf32>
    %14 = vector.extract_strided_slice %5 {offsets = [3, 0], sizes = [1, 128], strides = [1, 1]} : vector<8x128xf32> to vector<1x128xf32>
    %15 = vector.extract_strided_slice %5 {offsets = [4, 0], sizes = [1, 128], strides = [1, 1]} : vector<8x128xf32> to vector<1x128xf32>
    %16 = vector.extract_strided_slice %5 {offsets = [5, 0], sizes = [1, 128], strides = [1, 1]} : vector<8x128xf32> to vector<1x128xf32>
    %17 = vector.extract_strided_slice %3 {offsets = [0, 0], sizes = [64, 1], strides = [1, 1]} : vector<64x2xf32> to vector<64x1xf32>
    %18 = vector.shape_cast %17 : vector<64x1xf32> to vector<64x1xf32>
    %19 = vector.broadcast %18 : vector<64x1xf32> to vector<64x128xf32>
    %20 = vector.extract_strided_slice %3 {offsets = [0, 1], sizes = [64, 1], strides = [1, 1]} : vector<64x2xf32> to vector<64x1xf32>
    %21 = vector.shape_cast %20 : vector<64x1xf32> to vector<64x1xf32>
    %22 = vector.broadcast %21 : vector<64x1xf32> to vector<64x128xf32>
    %23 = vector.broadcast %6 : vector<1x128xf32> to vector<64x128xf32>
    %24 = arith.mulf %19, %23 : vector<64x128xf32>
    %25 = vector.broadcast %8 : vector<1x128xf32> to vector<64x128xf32>
    %26 = arith.addf %25, %24 : vector<64x128xf32>
    %27 = vector.broadcast %11 : vector<1x128xf32> to vector<64x128xf32>
    %28 = arith.mulf %19, %27 : vector<64x128xf32>
    %29 = vector.broadcast %13 : vector<1x128xf32> to vector<64x128xf32>
    %30 = arith.addf %29, %28 : vector<64x128xf32>
    %31 = vector.broadcast %7 : vector<1x128xf32> to vector<64x128xf32>
    %32 = arith.mulf %22, %31 : vector<64x128xf32>
    %33 = arith.addf %26, %32 : vector<64x128xf32>
    %34 = vector.broadcast %12 : vector<1x128xf32> to vector<64x128xf32>
    %35 = arith.mulf %22, %34 : vector<64x128xf32>
    %36 = arith.addf %30, %35 : vector<64x128xf32>
    %37 = math.tanh %33 : vector<64x128xf32>
    %38 = vector.broadcast %9 : vector<1x128xf32> to vector<64x128xf32>
    %39 = arith.mulf %37, %38 : vector<64x128xf32>
    %cst = arith.constant dense<0.000000e+00> : vector<64xf32>
    %40 = vector.multi_reduction <add>, %39, %cst [1] : vector<64x128xf32> to vector<64xf32>
    %41 = vector.shape_cast %40 : vector<64xf32> to vector<64x1xf32>
    %cst_6 = arith.constant 2.500000e-01 : f32
    %42 = vector.broadcast %cst_6 : f32 to vector<64x1xf32>
    %43 = arith.mulf %41, %42 : vector<64x1xf32>
    %44 = vector.broadcast %10 : vector<1x1xf32> to vector<64x1xf32>
    %45 = arith.addf %43, %44 : vector<64x1xf32>
    %cst_7 = arith.constant 0.000000e+00 : f32
    %46 = vector.broadcast %cst_7 : f32 to vector<64x1xf32>
    %47 = arith.subf %46, %45 : vector<64x1xf32>
    %48 = arith.mulf %37, %37 : vector<64x128xf32>
    %cst_8 = arith.constant 1.000000e+00 : f32
    %49 = vector.broadcast %cst_8 : f32 to vector<64x128xf32>
    %50 = arith.subf %49, %48 : vector<64x128xf32>
    %51 = vector.broadcast %9 : vector<1x128xf32> to vector<64x128xf32>
    %52 = arith.mulf %50, %51 : vector<64x128xf32>
    %53 = arith.mulf %52, %36 : vector<64x128xf32>
    %54 = vector.broadcast %14 : vector<1x128xf32> to vector<64x128xf32>
    %55 = arith.mulf %37, %54 : vector<64x128xf32>
    %56 = arith.addf %53, %55 : vector<64x128xf32>
    %57 = vector.broadcast %47 : vector<64x1xf32> to vector<64x128xf32>
    %58 = vector.broadcast %16 : vector<1x128xf32> to vector<64x128xf32>
    %59 = arith.mulf %57, %58 : vector<64x128xf32>
    %60 = vector.broadcast %15 : vector<1x128xf32> to vector<64x128xf32>
    %61 = arith.addf %60, %59 : vector<64x128xf32>
    %62 = tpu.concatenate %56, %61 in 1 : vector<64x128xf32>, vector<64x128xf32> -> vector<64x256xf32>
    %c0_9 = arith.constant 0 : index
    %c0_10 = arith.constant 0 : index
    %63 = vector.load %arg7[%c0_9, %c0_10] : memref<256x256xf32, #tpu.memory_space<vmem>>, vector<256x256xf32>
    %cst_11 = arith.constant dense<0.000000e+00> : vector<256x256xf32>
    %64 = tpu.matmul %62, %62, %cst_11 {dimension_numbers = #tpu.dot_dimension_numbers<[0], [0], [1], [1], [0, 1, 1, 1], [], []>} : vector<64x256xf32>, vector<64x256xf32>, vector<256x256xf32> -> vector<256x256xf32>
    %65 = arith.addf %63, %64 : vector<256x256xf32>
    %c0_12 = arith.constant 0 : index
    %c0_13 = arith.constant 0 : index
    %66 = vector.load %arg7[%c0_12, %c0_13] : memref<256x256xf32, #tpu.memory_space<vmem>>, vector<256x256xf32>
    tpu.vector_store %arg7[%c0_12, %c0_13], %65 {strides = array<i32>} : memref<256x256xf32, #tpu.memory_space<vmem>>, vector<256x256xf32>,
    %c3_i32 = arith.constant 3 : i32
    %67 = arith.cmpi eq, %arg0, %c3_i32 : i32
    %68 = arith.extui %67 : i1 to i32
    %c0_i32_14 = arith.constant 0 : i32
    %69 = arith.cmpi ne, %68, %c0_i32_14 : i32
    scf.if %69 {
      %c129 = arith.constant 129 : index
      %c0_15 = arith.constant 0 : index
      %70 = vector.load %arg4[%c129, %c0_15] : memref<256x256xf32, #tpu.memory_space<vmem>>, vector<1x256xf32>
      %cst_16 = arith.constant 1.000000e+00 : f32
      %71 = vector.broadcast %cst_16 : f32 to vector<1x256xf32>
      %72 = arith.subf %71, %70 : vector<1x256xf32>
      %c129_17 = arith.constant 129 : index
      %c0_18 = arith.constant 0 : index
      %73 = vector.load %arg7[%c129_17, %c0_18] : memref<256x256xf32, #tpu.memory_space<vmem>>, vector<1x256xf32>
      %74 = arith.mulf %73, %72 : vector<1x256xf32>
      %c0_19 = arith.constant 0 : index
      %c0_20 = arith.constant 0 : index
      %75 = vector.load %arg7[%c0_19, %c0_20] : memref<256x256xf32, #tpu.memory_space<vmem>>, vector<256x256xf32>
      %76 = vector.broadcast %72 : vector<1x256xf32> to vector<256x256xf32>
      %77 = arith.mulf %75, %76 : vector<256x256xf32>
      %c0_21 = arith.constant 0 : index
      %c0_22 = arith.constant 0 : index
      %78 = vector.load %arg5[%c0_21, %c0_22] : memref<256x256xf32, #tpu.memory_space<vmem>>, vector<256x256xf32>
      tpu.vector_store %arg5[%c0_21, %c0_22], %77 {strides = array<i32>} : memref<256x256xf32, #tpu.memory_space<vmem>>, vector<256x256xf32>,
      %c129_23 = arith.constant 129 : index
      %c0_24 = arith.constant 0 : index
      %79 = vector.load %arg5[%c129_23, %c0_24] : memref<256x256xf32, #tpu.memory_space<vmem>>, vector<1x256xf32>
      tpu.vector_store %arg5[%c129_23, %c0_24], %70 {strides = array<i32>} : memref<256x256xf32, #tpu.memory_space<vmem>>, vector<1x256xf32>,
      %cst_25 = arith.constant 0.000000e+00 : f32
      %80 = vector.broadcast %cst_25 : f32 to vector<8x256xf32>
      %c0_26 = arith.constant 0 : index
      %c0_27 = arith.constant 0 : index
      %81 = vector.load %arg6[%c0_26, %c0_27] : memref<8x256xf32, #tpu.memory_space<vmem>>, vector<8x256xf32>
      tpu.vector_store %arg6[%c0_26, %c0_27], %80 {strides = array<i32>} : memref<8x256xf32, #tpu.memory_space<vmem>>, vector<8x256xf32>,
      %c0_28 = arith.constant 0 : index
      %c0_29 = arith.constant 0 : index
      %82 = vector.load %arg6[%c0_28, %c0_29] : memref<8x256xf32, #tpu.memory_space<vmem>>, vector<1x256xf32>
      tpu.vector_store %arg6[%c0_28, %c0_29], %74 {strides = array<i32>} : memref<8x256xf32, #tpu.memory_space<vmem>>, vector<1x256xf32>,
    } else {
    }
    return
  }
  func.func @transform_0(%arg0: i32) -> (i32, i32) {
    %c0_i32 = arith.constant 0 : i32
    %c0_i32_0 = arith.constant 0 : i32
    return %arg0, %c0_i32 : i32, i32
  }
  func.func @transform_1(%arg0: i32) -> (i32, i32) {
    %c0_i32 = arith.constant 0 : i32
    %c0_i32_0 = arith.constant 0 : i32
    %c0_i32_1 = arith.constant 0 : i32
    return %c0_i32, %c0_i32_0 : i32, i32
  }
  func.func @transform_2(%arg0: i32) -> (i32, i32) {
    %c0_i32 = arith.constant 0 : i32
    %c0_i32_0 = arith.constant 0 : i32
    %c0_i32_1 = arith.constant 0 : i32
    return %c0_i32, %c0_i32_0 : i32, i32
  }
  func.func @transform_3(%arg0: i32) -> (i32, i32) {
    %c0_i32 = arith.constant 0 : i32
    %c0_i32_0 = arith.constant 0 : i32
    %c0_i32_1 = arith.constant 0 : i32
    return %c0_i32, %c0_i32_0 : i32, i32
  }
  func.func @transform_4(%arg0: i32) -> (i32, i32) {
    %c0_i32 = arith.constant 0 : i32
    %c0_i32_0 = arith.constant 0 : i32
    %c0_i32_1 = arith.constant 0 : i32
    return %c0_i32, %c0_i32_0 : i32, i32
  }
  func.func @transform_5(%arg0: i32) -> (i32, i32) {
    %c0_i32 = arith.constant 0 : i32
    %c0_i32_0 = arith.constant 0 : i32
    %c0_i32_1 = arith.constant 0 : i32
    return %c0_i32, %c0_i32_0 : i32, i32
  }
}

</mosaic_0001>

<bundles_post_ra>
// kernel: tile.7
= control target key start
LH: loop header
LB: loop body
LE: loop exit
PB: predicated region body
PF: predicated region fallthrough
CT: control target
= control target key end

     0   :  { %vm21_vm0 = vcmask 261120   ;;  %s56_s14 = smov 32   ;;  %s57_s15 = smov 64   ;;  %vm27_vm1 = vcmask 1048320   ;;  %vm33_vm2 = vcmask 785920   ;;  %vm39_vm3 = vcmask 523520   ;;  %s83_s0 = inlined_call_operand.vmem [shape: f32[4,4,32], index: 0, kind: input, shape index: {}]   ;;  %s84_s1 = inlined_call_operand.vmem [shape: f32[4,128], index: 1, kind: output, shape index: {}]  }
   0x1   :  { %v49_v0 = vld [vmem:[%s83_s0 + $0xc] sm:$0xf]  ;;  %v50_v1 = vld [vmem:[%s83_s0 + $0x8] sm:$0xf]  ;;  %v51_v2 = vld [vmem:[%s83_s0 + $0x4] sm:$0xf] }
   0x2   :  { %8 = vst [vmem:[#allocation1 + $0x18] sm:$0xf] %v49_v0  ;;  %13 = vst [vmem:[#allocation1 + $0x10] sm:$0xf] %v50_v1  ;;  %v18_v3 = vld [vmem:[%s83_s0] sm:$0xf] }
   0x3   :  { %17 = vst [vmem:[#allocation1 + $0x8] sm:$0xf] %v51_v2  ;;  %19 = vst [vmem:[#allocation1] sm:$0xf] %v18_v3  ;;  %s55_s0 = smov 96  }
   0xa   :  { %v24_v4 = vld [vmem:[#allocation1 + $0x3] ss:$8 sm:$0xf]   ;;  %v36_v5 = vld [vmem:[#allocation1 + $0x1] ss:$8 sm:$0xf]  }
   0xb   :  { %25 = vrot.lane.b32.xlu0 %v24_v4, %s55_s0  ;;  %v20_v6 = vld [vmem:[#allocation1] ss:$8 sm:$0xf]   ;;  %v30_v7 = vld [vmem:[#allocation1 + $0x2] ss:$8 sm:$0xf]   ;;  %37 = vrot.lane.b32.xlu1 %v36_v5, %s56_s14 }
   0xc   :  { %22 = vst.msk [vmem:[#allocation0] sm:$0xf] %vm21_vm0, %v20_v6  }
   0xf   :  { %31 = vrot.lane.b32.xlu0 %v30_v7, %s57_s15 }
  0x7d   :  { %v26_v8 = vpop.permute.xlu0 %25   ;;  %v38_v9 = vpop.permute.xlu1 %37  }
  0x7e   :  { %28 = vst.msk [vmem:[#allocation0] sm:$0xf] %vm27_vm1, %v26_v8  }
  0x81   :  { %v32_v10 = vpop.permute.xlu0 %31  }
  0x82   :  { %34 = vst.msk [vmem:[#allocation0] sm:$0xf] %vm33_vm2, %v32_v10  }
  0x83   :  { %40 = vst.msk [vmem:[#allocation0] sm:$0xf] %vm39_vm3, %v38_v9  }
  0x8a   :  { %v44_v11 = vld [vmem:[#allocation0] sm:$0xf] }
  0x8b   :  { %46 = vst [vmem:[%s84_s1] sm:$0xf] %v44_v11 }

// kernel: normal_system.1
= control target key start
LH: loop header
LB: loop body
LE: loop exit
PB: predicated region body
PF: predicated region fallthrough
CT: control target
= control target key end

     0   :  { %11 = vsyncpa [#allocation4], 0  ;;  %s2336_s0 = inlined_call_operand.vmem [shape: f32[256,2], index: 0, kind: input, shape index: {}]   ;;  %s2337_s1 = inlined_call_operand.vmem [shape: f32[8,128], index: 1, kind: input, shape index: {}]   ;;  %s2338_s2 = inlined_call_operand.vmem [shape: f32[8,128], index: 2, kind: input, shape index: {}]   ;;  %s2339_s3 = inlined_call_operand.hbm [shape: f32[256,256], index: 3, kind: input, shape index: {}]   ;;  %s2340_s4 = inlined_call_operand.hbm [shape: f32[256,256], index: 4, kind: output, shape index: {0}]   ;;  %s2341_s5 = inlined_call_operand.hbm [shape: f32[8,256], index: 5, kind: output, shape index: {1}]  }
   0x1   :  { %12 = vsyncpa [#allocation5], 0 }
   0x2   :  { %13 = vsyncpa [#allocation8], 0  ;;  %s1904_s18 = smov 0  }
   0x3 LB: > { %s1910_s19 = sadd.s32 4294967295, %s1861_s18   ;;  %p1626_p0 = scmp.ge.s32.totalorder %s1861_s18, 1  ;;  %s1861_s18 = sphi %s1904_s18, %s19_s18  }
   0x4   : > { %p155_p1 = scmp.lt.s32.totalorder %s1861_s18, 5  ;;  %s1863_s20 = smov [#allocation3]  }
   0x5   : > { %s173_s21 = sshll.u32 %s1863_s20, 4  ;;  %p2342_p4 = scmp.eq.s32.totalorder %s1910_s19, 0  ;;  %s174_s21 = int_to_ptr.vmem [resolvable:$true] %s173_s21 }
   0x6   : > { %p1915_p3 = pnand %p1626_p0, %p155_p1  ;;  %s1763_s26 = scalar_lea.hbm %s2339_s3, 8192 }
   0x7   : > { %p1764_p7 = scmp.ne.s32.totalorder %s2339_s3, %s1763_s26  ;;  %p1770_p11 = scmp.lt.u32.totalorder %s1763_s26, %s2339_s3 }
   0x8   : > { %s2344_s22 = scalar_select %p1915_p3, 1, 0 }
   0x9   : > { %p1709_p5 = pneg %p1915_p3 }
   0xb   : > { %p1924_p6 = pnand %p2342_p4, %p1709_p5 }
   0xd   : > { %p1765_p8 = pneg %p1924_p6 }
   0xf   : > { %p1766_p9 = pnand %p1765_p8, %p1764_p7 }
  0x11   : > { %p1767_p10 = pneg %p1766_p9 }
  0x13   : > { %p1772_p12 = pnand %p1770_p11, %p1767_p10 }
  0x15   : > { %1775 = shalt.err (!%p1772_p12)
}
  0x16   : > { %s1776_s6 = scalar_lea.vmem %s174_s21, 8192  ;;  %p1784_p5 = scmp.lt.s32.totalorder %s174_s21, %s174_s21 }
  0x17   : > { %p1777_p13 = scmp.ne.s32.totalorder %s174_s21, %s1776_s6  ;;  %p1785_p2 = scmp.lt.s32.totalorder %s1776_s6, %s1776_s6 }
  0x19   : > { %p1779_p0 = pnand %p1777_p13, %p1765_p8  ;;  %p1786_p4 = por %p1785_p2, %p1784_p5 }
  0x1b   : > { %p1780_p1 = pneg %p1779_p0 }
  0x1d   : > { %p1787_p3 = pnand %p1786_p4, %p1780_p1 }
  0x1f   : > { %1790 = shalt.err (!%p1787_p3)
}
  0x20   : > { %s1864_s7 = smov 256   ;;  %s1865_s8 = smov 16  }
  0x21   : > { %1712 = dma.hbm_to_vmem [thread:$0]  (!%p1924_p6), %s2339_s3, 8192, %s174_s21, [#allocation4], %s1864_s7, %s1864_s7, %s1865_s8  }
  0x22   : > { %p2346_p7 = scmp.ne.s32.totalorder %s2344_s22, 0 }
  0x23   : > { %p2347_p9 = scmp.eq.s32.totalorder (!%p2346_p7), %s1910_s19, 0 }
  0x24   : > { %198 = sbr.rel (%p2346_p7) target bundleno = 990 (0x3de), region = 36 }
  0x2b   : > { %1848 = dma.done.wait (%p2347_p9), [#allocation4], 8192   ;;  %p2348_p8 = pmov %p2347_p9 }
  0x2c   : > { %s1631_s11 = sshll.u32 %s1910_s19, 3  ;;  %p2349_p3 = scmp.ne.s32.totalorder %s1910_s19, 0 }
  0x2d   : > { %1850 = vsyncadd (%p2348_p8), [#allocation4], 4294959104  ;;  %p222_p2 = scmp.lt.s32.totalorder %s1631_s11, 31  ;;  %v231_v0 = vld [vmem:[#allocation3] sm:$0xff] (!%p2349_p3)  ;;  %v232_v1 = vld [vmem:[#allocation3 + $0x8] sm:$0xff] (!%p2349_p3) }
  0x2e   : > { %230 = sbr.rel (%p2349_p3) target bundleno = 78 (0x4e), region = 44  ;;  %v233_v2 = vld [vmem:[#allocation3 + $0x10] sm:$0xff] (!%p2349_p3)  ;;  %295 = vst [vmem:[#allocation2] sm:$0xff] (!%p2349_p3), %v231_v0  ;;  %296 = vst [vmem:[#allocation2 + $0x8] sm:$0xff] (!%p2349_p3), %v232_v1  ;;  %v234_v3 = vld [vmem:[#allocation3 + $0x18] sm:$0xff] (!%p2349_p3) }
  0x2f   : > { %s2353_s11 = smov (!%p222_p2, %s1631_s11), 31  ;;  %297 = vst [vmem:[#allocation2 + $0x10] sm:$0xff] (!%p2349_p3), %v233_v2  ;;  %v235_v4 = vld [vmem:[#allocation3 + $0x20] sm:$0xff] (!%p2349_p3)  ;;  %v236_v5 = vld [vmem:[#allocation3 + $0x28] sm:$0xff] (!%p2349_p3)  ;;  %298 = vst [vmem:[#allocation2 + $0x18] sm:$0xff] (!%p2349_p3), %v234_v3 }
  0x30   : > { %s1632_s12 = sshll.u32 %s2353_s11, 3  ;;  %299 = vst [vmem:[#allocation2 + $0x20] sm:$0xff] (!%p2349_p3), %v235_v4  ;;  %300 = vst [vmem:[#allocation2 + $0x28] sm:$0xff] (!%p2349_p3), %v236_v5  ;;  %v237_v6 = vld [vmem:[#allocation3 + $0x30] sm:$0xff] (!%p2349_p3)  ;;  %v238_v7 = vld [vmem:[#allocation3 + $0x38] sm:$0xff] (!%p2349_p3) }
  0x31   : > { %s1954_s15 = scalar_lea.vmem %s2336_s0, %s1632_s12  ;;  %v239_v8 = vld [vmem:[#allocation3 + $0x40] sm:$0xff] (!%p2349_p3)  ;;  %301 = vst [vmem:[#allocation2 + $0x30] sm:$0xff] (!%p2349_p3), %v237_v6  ;;  %302 = vst [vmem:[#allocation2 + $0x38] sm:$0xff] (!%p2349_p3), %v238_v7  ;;  %v240_v9 = vld [vmem:[#allocation3 + $0x48] sm:$0xff] (!%p2349_p3) }
  0x32   : > { %303 = vst [vmem:[#allocation2 + $0x40] sm:$0xff] (!%p2349_p3), %v239_v8  ;;  %v241_v10 = vld [vmem:[#allocation3 + $0x50] sm:$0xff] (!%p2349_p3)  ;;  %v242_v11 = vld [vmem:[#allocation3 + $0x58] sm:$0xff] (!%p2349_p3)  ;;  %304 = vst [vmem:[#allocation2 + $0x48] sm:$0xff] (!%p2349_p3), %v240_v9 }
  0x33   : > { %305 = vst [vmem:[#allocation2 + $0x50] sm:$0xff] (!%p2349_p3), %v241_v10  ;;  %306 = vst [vmem:[#allocation2 + $0x58] sm:$0xff] (!%p2349_p3), %v242_v11  ;;  %v243_v12 = vld [vmem:[#allocation3 + $0x60] sm:$0xff] (!%p2349_p3)  ;;  %v244_v13 = vld [vmem:[#allocation3 + $0x68] sm:$0xff] (!%p2349_p3) }
  0x34   : > { %v245_v14 = vld [vmem:[#allocation3 + $0x70] sm:$0xff] (!%p2349_p3)  ;;  %307 = vst [vmem:[#allocation2 + $0x60] sm:$0xff] (!%p2349_p3), %v243_v12  ;;  %308 = vst [vmem:[#allocation2 + $0x68] sm:$0xff] (!%p2349_p3), %v244_v13  ;;  %v246_v15 = vld [vmem:[#allocation3 + $0x78] sm:$0xff] (!%p2349_p3) }
  0x35   : > { %309 = vst [vmem:[#allocation2 + $0x70] sm:$0xff] %v245_v14  ;;  %v247_v16 = vld [vmem:[#allocation3 + $0x80] sm:$0xff]  ;;  %v248_v17 = vld [vmem:[#allocation3 + $0x88] sm:$0xff]  ;;  %310 = vst [vmem:[#allocation2 + $0x78] sm:$0xff] %v246_v15 }
  0x36   : > { %311 = vst [vmem:[#allocation2 + $0x80] sm:$0xff] %v247_v16  ;;  %312 = vst [vmem:[#allocation2 + $0x88] sm:$0xff] %v248_v17  ;;  %v249_v18 = vld [vmem:[#allocation3 + $0x90] sm:$0xff]  ;;  %v250_v19 = vld [vmem:[#allocation3 + $0x98] sm:$0xff] }
  0x37   : > { %v251_v20 = vld [vmem:[#allocation3 + $0xa0] sm:$0xff]  ;;  %313 = vst [vmem:[#allocation2 + $0x90] sm:$0xff] %v249_v18  ;;  %314 = vst [vmem:[#allocation2 + $0x98] sm:$0xff] %v250_v19  ;;  %v252_v21 = vld [vmem:[#allocation3 + $0xa8] sm:$0xff] }
  0x38   : > { %315 = vst [vmem:[#allocation2 + $0xa0] sm:$0xff] %v251_v20  ;;  %v253_v22 = vld [vmem:[#allocation3 + $0xb0] sm:$0xff]  ;;  %v254_v23 = vld [vmem:[#allocation3 + $0xb8] sm:$0xff]  ;;  %316 = vst [vmem:[#allocation2 + $0xa8] sm:$0xff] %v252_v21 }
  0x39   : > { %317 = vst [vmem:[#allocation2 + $0xb0] sm:$0xff] %v253_v22  ;;  %318 = vst [vmem:[#allocation2 + $0xb8] sm:$0xff] %v254_v23  ;;  %v255_v24 = vld [vmem:[#allocation3 + $0xc0] sm:$0xff]  ;;  %v256_v25 = vld [vmem:[#allocation3 + $0xc8] sm:$0xff] }
  0x3a   : > { %v257_v26 = vld [vmem:[#allocation3 + $0xd0] sm:$0xff]  ;;  %319 = vst [vmem:[#allocation2 + $0xc0] sm:$0xff] %v255_v24  ;;  %320 = vst [vmem:[#allocation2 + $0xc8] sm:$0xff] %v256_v25  ;;  %v258_v27 = vld [vmem:[#allocation3 + $0xd8] sm:$0xff] }
  0x3b   : > { %321 = vst [vmem:[#allocation2 + $0xd0] sm:$0xff] %v257_v26  ;;  %v259_v28 = vld [vmem:[#allocation3 + $0xe0] sm:$0xff]  ;;  %v260_v29 = vld [vmem:[#allocation3 + $0xe8] sm:$0xff]  ;;  %322 = vst [vmem:[#allocation2 + $0xd8] sm:$0xff] %v258_v27 }
  0x3c   : > { %323 = vst [vmem:[#allocation2 + $0xe0] sm:$0xff] %v259_v28  ;;  %324 = vst [vmem:[#allocation2 + $0xe8] sm:$0xff] %v260_v29  ;;  %v261_v30 = vld [vmem:[#allocation3 + $0xf0] sm:$0xff]  ;;  %v262_v31 = vld [vmem:[#allocation3 + $0xf8] sm:$0xff] }
  0x3d   : > { %v263_v32 = vld [vmem:[#allocation3 + $0x100] sm:$0xff]  ;;  %325 = vst [vmem:[#allocation2 + $0xf0] sm:$0xff] %v261_v30  ;;  %326 = vst [vmem:[#allocation2 + $0xf8] sm:$0xff] %v262_v31  ;;  %v264_v33 = vld [vmem:[#allocation3 + $0x108] sm:$0xff] }
  0x3e   : > { %327 = vst [vmem:[#allocation2 + $0x100] sm:$0xff] %v263_v32  ;;  %v265_v34 = vld [vmem:[#allocation3 + $0x110] sm:$0xff]  ;;  %v266_v35 = vld [vmem:[#allocation3 + $0x118] sm:$0xff]  ;;  %328 = vst [vmem:[#allocation2 + $0x108] sm:$0xff] %v264_v33 }
  0x3f   : > { %329 = vst [vmem:[#allocation2 + $0x110] sm:$0xff] %v265_v34  ;;  %330 = vst [vmem:[#allocation2 + $0x118] sm:$0xff] %v266_v35  ;;  %v267_v36 = vld [vmem:[#allocation3 + $0x120] sm:$0xff]  ;;  %v268_v37 = vld [vmem:[#allocation3 + $0x128] sm:$0xff] }
  0x40   : > { %v269_v38 = vld [vmem:[#allocation3 + $0x130] sm:$0xff]  ;;  %331 = vst [vmem:[#allocation2 + $0x120] sm:$0xff] %v267_v36  ;;  %332 = vst [vmem:[#allocation2 + $0x128] sm:$0xff] %v268_v37  ;;  %v270_v39 = vld [vmem:[#allocation3 + $0x138] sm:$0xff] }
  0x41   : > { %333 = vst [vmem:[#allocation2 + $0x130] sm:$0xff] %v269_v38  ;;  %v271_v40 = vld [vmem:[#allocation3 + $0x140] sm:$0xff]  ;;  %v272_v41 = vld [vmem:[#allocation3 + $0x148] sm:$0xff]  ;;  %334 = vst [vmem:[#allocation2 + $0x138] sm:$0xff] %v270_v39 }
  0x42   : > { %335 = vst [vmem:[#allocation2 + $0x140] sm:$0xff] %v271_v40  ;;  %336 = vst [vmem:[#allocation2 + $0x148] sm:$0xff] %v272_v41  ;;  %v273_v42 = vld [vmem:[#allocation3 + $0x150] sm:$0xff]  ;;  %v274_v43 = vld [vmem:[#allocation3 + $0x158] sm:$0xff] }
  0x43   : > { %v275_v44 = vld [vmem:[#allocation3 + $0x160] sm:$0xff]  ;;  %337 = vst [vmem:[#allocation2 + $0x150] sm:$0xff] %v273_v42  ;;  %338 = vst [vmem:[#allocation2 + $0x158] sm:$0xff] %v274_v43  ;;  %v276_v45 = vld [vmem:[#allocation3 + $0x168] sm:$0xff] }
  0x44   : > { %339 = vst [vmem:[#allocation2 + $0x160] sm:$0xff] %v275_v44  ;;  %v277_v46 = vld [vmem:[#allocation3 + $0x170] sm:$0xff]  ;;  %v278_v47 = vld [vmem:[#allocation3 + $0x178] sm:$0xff]  ;;  %340 = vst [vmem:[#allocation2 + $0x168] sm:$0xff] %v276_v45 }
  0x45   : > { %341 = vst [vmem:[#allocation2 + $0x170] sm:$0xff] %v277_v46  ;;  %342 = vst [vmem:[#allocation2 + $0x178] sm:$0xff] %v278_v47  ;;  %v279_v48 = vld [vmem:[#allocation3 + $0x180] sm:$0xff]  ;;  %v280_v49 = vld [vmem:[#allocation3 + $0x188] sm:$0xff] }
  0x46   : > { %v281_v50 = vld [vmem:[#allocation3 + $0x190] sm:$0xff]  ;;  %343 = vst [vmem:[#allocation2 + $0x180] sm:$0xff] %v279_v48  ;;  %344 = vst [vmem:[#allocation2 + $0x188] sm:$0xff] %v280_v49  ;;  %v282_v51 = vld [vmem:[#allocation3 + $0x198] sm:$0xff] }
  0x47   : > { %345 = vst [vmem:[#allocation2 + $0x190] sm:$0xff] %v281_v50  ;;  %v283_v52 = vld [vmem:[#allocation3 + $0x1a0] sm:$0xff]  ;;  %v284_v53 = vld [vmem:[#allocation3 + $0x1a8] sm:$0xff]  ;;  %346 = vst [vmem:[#allocation2 + $0x198] sm:$0xff] %v282_v51 }
  0x48   : > { %347 = vst [vmem:[#allocation2 + $0x1a0] sm:$0xff] %v283_v52  ;;  %348 = vst [vmem:[#allocation2 + $0x1a8] sm:$0xff] %v284_v53  ;;  %v285_v54 = vld [vmem:[#allocation3 + $0x1b0] sm:$0xff]  ;;  %v286_v55 = vld [vmem:[#allocation3 + $0x1b8] sm:$0xff] }
  0x49   : > { %v287_v56 = vld [vmem:[#allocation3 + $0x1c0] sm:$0xff]  ;;  %349 = vst [vmem:[#allocation2 + $0x1b0] sm:$0xff] %v285_v54  ;;  %350 = vst [vmem:[#allocation2 + $0x1b8] sm:$0xff] %v286_v55  ;;  %v288_v57 = vld [vmem:[#allocation3 + $0x1c8] sm:$0xff] }
  0x4a   : > { %351 = vst [vmem:[#allocation2 + $0x1c0] sm:$0xff] %v287_v56  ;;  %v289_v58 = vld [vmem:[#allocation3 + $0x1d0] sm:$0xff]  ;;  %v290_v59 = vld [vmem:[#allocation3 + $0x1d8] sm:$0xff]  ;;  %352 = vst [vmem:[#allocation2 + $0x1c8] sm:$0xff] %v288_v57 }
  0x4b   : > { %353 = vst [vmem:[#allocation2 + $0x1d0] sm:$0xff] %v289_v58  ;;  %354 = vst [vmem:[#allocation2 + $0x1d8] sm:$0xff] %v290_v59  ;;  %v291_v60 = vld [vmem:[#allocation3 + $0x1e0] sm:$0xff]  ;;  %v292_v61 = vld [vmem:[#allocation3 + $0x1e8] sm:$0xff] }
  0x4c   : > { %v293_v62 = vld [vmem:[#allocation3 + $0x1f0] sm:$0xff]  ;;  %355 = vst [vmem:[#allocation2 + $0x1e0] sm:$0xff] %v291_v60  ;;  %356 = vst [vmem:[#allocation2 + $0x1e8] sm:$0xff] %v292_v61  ;;  %v294_v63 = vld [vmem:[#allocation3 + $0x1f8] sm:$0xff] }
  0x4d   : > { %357 = vst [vmem:[#allocation2 + $0x1f0] sm:$0xff] %v293_v62  ;;  %358 = vst [vmem:[#allocation2 + $0x1f8] sm:$0xff] %v294_v63 }
  0x4e PF: > { %v359_v0 = vld [vmem:[%s1954_s15] sm:$0xff]  ;;  %v1866_v1 = vmov 1   ;;  %v1867_v2 = vmov 0   ;;  %v360_v3 = vld [vmem:[%s1954_s15 + $0x8] sm:$0xff]  ;;  %v361_v4 = vld [vmem:[%s1954_s15 + $0x10] sm:$0xff]  ;;  %v441_v10 = vlaneseq  ;;  %vm837_vm0 = vcmask 523264  }
  0x4f   : > { %1739 = vset.pattern.permute.xlu1 %v1866_v1  ;;  %1738 = vset.pattern.permute.xlu0 %v1867_v2  ;;  %v363_v5 = vld [vmem:[%s1954_s15 + $0x20] sm:$0xff]  ;;  %v362_v6 = vld [vmem:[%s1954_s15 + $0x18] sm:$0xff]  ;;  %v364_v8 = vld [vmem:[%s1954_s15 + $0x28] sm:$0xff]  ;;  %p1666_p4 = scmp.ne.s32.totalorder %s1910_s19, 3 }
  0x50   : > { %410 = vperm.xlu1 %1739, %v359_v0   ;;  %371 = vperm.xlu0 %1738, %v359_v0   ;;  %v366_v7 = vld [vmem:[%s1954_s15 + $0x38] sm:$0xff]  ;;  %v365_v9 = vld [vmem:[%s1954_s15 + $0x30] sm:$0xff]  ;;  %v1967_v11 = vshrl.u32 %v441_v10, 7  ;;  %v1978_v14 = vld [vmem:[%s2337_s1] sm:$0xff]  ;;  %vm2215_vm1 = vcmp.lt.s32.totalorder (!%p1666_p4), %v441_v10, 256 }
  0x51   : > { %v1983_v15 = vld [vmem:[%s2338_s2] sm:$0xff] }
  0x52   : > { %v1970_v12 = vsub.s32 1, %v1967_v11  ;;  %v1973_v13 = vsub.s32 0, %v1967_v11  ;;  %v455_v16 = vsub.s32 2, %v1967_v11  ;;  %v539_v42 = vsub.s32 3, %v1967_v11 }
  0x54   : > { %1740 = vset.pattern.permute.xlu1 %v1867_v2  ;;  %376 = vperm.xlu0 %1738, %v360_v3   ;;  %v1988_v17 = vrot.slane %v1983_v15, %v1970_v12  ;;  %v1992_v18 = vrot.slane %v1978_v14, %v1973_v13  ;;  %v1996_v19 = vrot.slane %v1983_v15, %v1973_v13 }
  0x55   : > { %381 = vperm.xlu1 %1740, %v361_v4   ;;  %v2000_v20 = vrot.slane %v1978_v14, %v1970_v12  ;;  %v2003_v21 = vrot.slane %v1978_v14, %v455_v16  ;;  %v2006_v22 = vrot.slane %v1983_v15, %v455_v16  ;;  %v2028_v51 = vrot.slane %v1978_v14, %v539_v42 }
  0x56   : > { %v2039_v61 = vrot.slane %v1983_v15, %v539_v42 }
  0x58   : > { %391 = vperm.xlu0 %1738, %v363_v5  }
  0x59   : > { %386 = vperm.xlu1 %1740, %v362_v6  }
  0x5c   : > { %1742 = vset.pattern.permute.xlu0 %v1866_v1 }
  0x5d   : > { %1741 = vset.pattern.permute.xlu1 %v1866_v1  ;;  %414 = vperm.xlu0 %1742, %v360_v3  }
  0x5e   : > { %418 = vperm.xlu1 %1741, %v361_v4  }
  0x61   : > { %426 = vperm.xlu0 %1742, %v363_v5  }
  0x62   : > { %422 = vperm.xlu1 %1741, %v362_v6  }
  0x65   : > { %1745 = vset.pattern.permute.xlu0 %v1867_v2 }
  0x66   : > { %1743 = vset.pattern.permute.xlu1 %v1867_v2  ;;  %406 = vperm.xlu0 %1745, %v366_v7  }
  0x67   : > { %396 = vperm.xlu1 %1743, %v364_v8  }
  0x6b   : > { %401 = vperm.xlu1 %1743, %v365_v9  }
  0x6f   : > { %1744 = vset.pattern.permute.xlu1 %v1866_v1 }
  0x70   : > { %430 = vperm.xlu1 %1744, %v364_v8  }
  0x74   : > { %434 = vperm.xlu1 %1744, %v365_v9  }
  0x78   : > { %438 = vperm.xlu1 %1744, %v366_v7  }
  0x7c   : > { %1746 = vset.pattern.permute.xlu1 %v1867_v2 }
  0xcf   : > { %v411_v23 = vpop.permute.xlu1 %410  ;;  %v372_v24 = vpop.permute.xlu0 %371 }
  0xd0   : > { %v513_v25 = vmul.f32 %v1988_v17, %v411_v23  ;;  %v445_v26 = vmul.f32 %v1992_v18, %v372_v24  ;;  %v469_v27 = vmul.f32 %v1996_v19, %v372_v24  ;;  %v493_v28 = vmul.f32 %v2000_v20, %v411_v23 }
  0xd2   : > { %v457_v29 = vadd.f32 %v2003_v21, %v445_v26  ;;  %v481_v30 = vadd.f32 %v2006_v22, %v469_v27 }
  0xd3   : > { %v377_v31 = vpop.permute.xlu0 %376 }
  0xd4   : > { %v501_v32 = vadd.f32 %v493_v28, %v457_v29  ;;  %v521_v33 = vadd.f32 %v513_v25, %v481_v30  ;;  %v470_v34 = vmul.f32 %v1996_v19, %v377_v31  ;;  %v382_v35 = vpop.permute.xlu1 %381  ;;  %v446_v43 = vmul.f32 %v1992_v18, %v377_v31 }
  0xd5   : > { %v471_v36 = vmul.f32 %v1996_v19, %v382_v35  ;;  %v447_v45 = vmul.f32 %v1992_v18, %v382_v35 }
  0xd6   : > { %1747 = vtanh.f32 %v501_v32  ;;  %v482_v37 = vadd.f32 %v2006_v22, %v470_v34  ;;  %v458_v52 = vadd.f32 %v2003_v21, %v446_v43 }
  0xd7   : > { %v483_v38 = vadd.f32 %v2006_v22, %v471_v36  ;;  %v392_v39 = vpop.permute.xlu0 %391  ;;  %v459_v56 = vadd.f32 %v2003_v21, %v447_v45 }
  0xd8   : > { %v473_v40 = vmul.f32 %v1996_v19, %v392_v39  ;;  %v387_v41 = vpop.permute.xlu1 %386  ;;  %v449_v48 = vmul.f32 %v1992_v18, %v392_v39 }
  0xd9   : > { %v472_v44 = vmul.f32 %v1996_v19, %v387_v41  ;;  %v448_v49 = vmul.f32 %v1992_v18, %v387_v41 }
  0xda   : > { %v485_v46 = vadd.f32 %v2006_v22, %v473_v40  ;;  %v461_v63 = vadd.f32 %v2003_v21, %v449_v48 }
  0xdb   : > { %v484_v47 = vadd.f32 %v2006_v22, %v472_v44  ;;  %v460_v0 = vadd.f32 %v2003_v21, %v448_v49 }
  0xdc   : > { %v415_v50 = vpop.permute.xlu0 %414 }
  0xdd   : > { %v494_v53 = vmul.f32 %v2000_v20, %v415_v50  ;;  %v514_v54 = vmul.f32 %v1988_v17, %v415_v50  ;;  %v419_v55 = vpop.permute.xlu1 %418 }
  0xde   : > { %v495_v57 = vmul.f32 %v2000_v20, %v419_v55  ;;  %v515_v58 = vmul.f32 %v1988_v17, %v419_v55 }
  0xdf   : > { %v502_v59 = vadd.f32 %v494_v53, %v458_v52  ;;  %v2036_v60 = vadd.f32 %v514_v54, %v482_v37 }
  0xe0   : > { %v1748_v62 = vpop.eup %1747  ;;  %v503_v1 = vadd.f32 %v495_v57, %v459_v56  ;;  %v2043_v2 = vadd.f32 %v515_v58, %v483_v38  ;;  %v427_v3 = vpop.permute.xlu0 %426 }
  0xe1   : > { %1749 = vtanh.f32 %v502_v59  ;;  %v497_v4 = vmul.f32 %v2000_v20, %v427_v3  ;;  %v517_v5 = vmul.f32 %v1988_v17, %v427_v3  ;;  %v423_v6 = vpop.permute.xlu1 %422  ;;  %v541_v7 = vmul.f32 %v1748_v62, %v2028_v51 }
  0xe2   : > { %1751 = vtanh.f32 %v503_v1  ;;  %v496_v8 = vmul.f32 %v2000_v20, %v423_v6  ;;  %v516_v9 = vmul.f32 %v1988_v17, %v423_v6  ;;  %v593_v16 = vmul.f32 %v1748_v62, %v1748_v62 }
  0xe3   : > { %v505_v23 = vadd.f32 %v497_v4, %v461_v63  ;;  %v2050_v24 = vadd.f32 %v517_v5, %v485_v46  ;;  %549 = vadd.xlane.f32.xlu0 %v541_v7  ;;  %v629_v25 = vmul.f32 %v1748_v62, %v2039_v61 }
  0xe4   : > { %v504_v26 = vadd.f32 %v496_v8, %v460_v0  ;;  %v2053_v27 = vadd.f32 %v516_v9, %v484_v47  ;;  %v601_v28 = vsub.f32 1.0, %v593_v16 }
  0xe5   : > { %1753 = vtanh.f32 %v505_v23  ;;  %v407_v29 = vpop.permute.xlu0 %406 }
  0xe6   : > { %1755 = vtanh.f32 %v504_v26  ;;  %v397_v30 = vpop.permute.xlu1 %396  ;;  %v476_v31 = vmul.f32 %v1996_v19, %v407_v29  ;;  %v609_v32 = vmul.f32 %v601_v28, %v2028_v51  ;;  %v452_v57 = vmul.f32 %v1992_v18, %v407_v29 }
  0xe7   : > { %v474_v34 = vmul.f32 %v1996_v19, %v397_v30  ;;  %v450_v41 = vmul.f32 %v1992_v18, %v397_v30 }
  0xe8   : > { %v2059_v35 = vadd.f32 %v2006_v22, %v476_v31  ;;  %v617_v36 = vmul.f32 %v609_v32, %v521_v33 }
  0xe9   : > { %v486_v37 = vadd.f32 %v2006_v22, %v474_v34  ;;  %v462_v55 = vadd.f32 %v2003_v21, %v450_v41 }
  0xea   : > { %v402_v38 = vpop.permute.xlu1 %401  ;;  %v2062_v39 = vadd.f32 %v629_v25, %v617_v36  ;;  %v464_v36 = vadd.f32 %v2003_v21, %v452_v57 }
  0xeb   : > { %v1750_v40 = vpop.eup %1749  ;;  %v451_v42 = vmul.f32 %v1992_v18, %v402_v38  ;;  %v475_v43 = vmul.f32 %v1996_v19, %v402_v38 }
  0xec   : > { %v1752_v44 = vpop.eup %1751  ;;  %v594_v45 = vmul.f32 %v1750_v40, %v1750_v40  ;;  %v542_v46 = vmul.f32 %v1750_v40, %v2028_v51  ;;  %v630_v47 = vmul.f32 %v1750_v40, %v2039_v61 }
  0xed   : > { %v595_v48 = vmul.f32 %v1752_v44, %v1752_v44  ;;  %v487_v33 = vadd.f32 %v2006_v22, %v475_v43  ;;  %v543_v49 = vmul.f32 %v1752_v44, %v2028_v51  ;;  %v631_v52 = vmul.f32 %v1752_v44, %v2039_v61 }
  0xee   : > { %v602_v50 = vsub.f32 1.0, %v594_v45  ;;  %551 = vadd.xlane.f32.xlu1 %v542_v46  ;;  %v463_v19 = vadd.f32 %v2003_v21, %v451_v42 }
  0xef   : > { %v1754_v53 = vpop.eup %1753  ;;  %v603_v54 = vsub.f32 1.0, %v595_v48  ;;  %v431_v56 = vpop.permute.xlu1 %430  ;;  %553 = vadd.xlane.f32.xlu0 %v543_v49 }
  0xf0   : > { %v1756_v58 = vpop.eup %1755  ;;  %v610_v59 = vmul.f32 %v602_v50, %v2028_v51  ;;  %v597_v22 = vmul.f32 %v1754_v53, %v1754_v53  ;;  %v498_v62 = vmul.f32 %v2000_v20, %v431_v56  ;;  %v518_v63 = vmul.f32 %v1988_v17, %v431_v56 }
  0xf1   : > { %v611_v0 = vmul.f32 %v603_v54, %v2028_v51  ;;  %v596_v1 = vmul.f32 %v1756_v58, %v1756_v58  ;;  %v545_v3 = vmul.f32 %v1754_v53, %v2028_v51  ;;  %v544_v4 = vmul.f32 %v1756_v58, %v2028_v51 }
  0xf2   : > { %v618_v5 = vmul.f32 %v610_v59, %v2036_v60  ;;  %v605_v6 = vsub.f32 1.0, %v597_v22  ;;  %v506_v7 = vadd.f32 %v498_v62, %v462_v55  ;;  %v526_v18 = vadd.f32 %v518_v63, %v486_v37 }
  0xf3   : > { %v619_v8 = vmul.f32 %v611_v0, %v2043_v2  ;;  %v604_v9 = vsub.f32 1.0, %v596_v1  ;;  %557 = vadd.xlane.f32.xlu1 %v545_v3  ;;  %v435_v16 = vpop.permute.xlu1 %434  ;;  %555 = vadd.xlane.f32.xlu0 %v544_v4  ;;  %v632_v23 = vmul.f32 %v1756_v58, %v2039_v61  ;;  %v633_v25 = vmul.f32 %v1754_v53, %v2039_v61 }
  0xf4   : > { %v613_v26 = vmul.f32 %v605_v6, %v2028_v51  ;;  %1757 = vtanh.f32 %v506_v7  ;;  %v499_v28 = vmul.f32 %v2000_v20, %v435_v16  ;;  %v519_v60 = vmul.f32 %v1988_v17, %v435_v16 }
  0xf5   : > { %v612_v29 = vmul.f32 %v604_v9, %v2028_v51  ;;  %v2089_v30 = vadd.f32 %v630_v47, %v618_v5  ;;  %v2091_v2 = vadd.f32 %v631_v52, %v619_v8  ;;  %v575_v0 = vsub.s32 4, %v1967_v11 }
  0xf6   : > { %v621_v31 = vmul.f32 %v613_v26, %v2050_v24  ;;  %v507_v32 = vadd.f32 %v499_v28, %v463_v19  ;;  %v527_v34 = vadd.f32 %v519_v60, %v487_v33 }
  0xf7   : > { %v620_v37 = vmul.f32 %v612_v29, %v2053_v27  ;;  %v439_v38 = vpop.permute.xlu1 %438  ;;  %v576_v1 = vrot.slane %v1978_v14, %v575_v0 }
  0xf8   : > { %1759 = vtanh.f32 %v507_v32  ;;  %v500_v40 = vmul.f32 %v2000_v20, %v439_v38  ;;  %v520_v41 = vmul.f32 %v1988_v17, %v439_v38  ;;  %v2098_v42 = vadd.f32 %v633_v25, %v621_v31 }
  0xf9   : > { %v2100_v43 = vadd.f32 %v632_v23, %v620_v37 }
  0xfa   : > { %v508_v44 = vadd.f32 %v500_v40, %v464_v36  ;;  %v528_v45 = vadd.f32 %v520_v41, %v2059_v35 }
  0xfc   : > { %1761 = vtanh.f32 %v508_v44 }
  0xfe   : > { %v1758_v24 = vpop.eup %1757 }
  0xff   : > { %v598_v46 = vmul.f32 %v1758_v24, %v1758_v24  ;;  %v546_v21 = vmul.f32 %v1758_v24, %v2028_v51  ;;  %v634_v27 = vmul.f32 %v1758_v24, %v2039_v61 }
 0x101   : > { %v606_v47 = vsub.f32 1.0, %v598_v46  ;;  %559 = vadd.xlane.f32.xlu0 %v546_v21 }
 0x102   : > { %v1760_v48 = vpop.eup %1759 }
 0x103   : > { %v614_v20 = vmul.f32 %v606_v47, %v2028_v51  ;;  %v599_v17 = vmul.f32 %v1760_v48, %v1760_v48  ;;  %v547_v33 = vmul.f32 %v1760_v48, %v2028_v51  ;;  %v635_v49 = vmul.f32 %v1760_v48, %v2039_v61 }
 0x104   : > { %v1868_v47 = vmov 0.0   ;;  %v687_v48 = vsub.s32 5, %v1967_v11  ;;  %v1675_v11 = vpack.c.bf16 %v2089_v30, %v2062_v39 }
 0x105   : > { %v622_v50 = vmul.f32 %v614_v20, %v526_v18  ;;  %v607_v52 = vsub.f32 1.0, %v599_v17  ;;  %561 = vadd.xlane.f32.xlu1 %v547_v33  ;;  %998 = vmatprep.mubr.f32.mxu0 %v1868_v47  ;;  %v700_v17 = vrot.slane %v1983_v15, %v575_v0 }
 0x106   : > { %v1762_v35 = vpop.eup %1761  ;;  %1094 = vmatprep.mubr.f32.mxu1 %v1868_v47  ;;  %v688_v20 = vrot.slane %v1983_v15, %v687_v48 }
 0x107   : > { %v615_v53 = vmul.f32 %v607_v52, %v2028_v51  ;;  %v600_v54 = vmul.f32 %v1762_v35, %v1762_v35  ;;  %v548_v55 = vmul.f32 %v1762_v35, %v2028_v51  ;;  %v2110_v19 = vadd.f32 %v634_v27, %v622_v50 }
 0x108   : > { %v636_v56 = vmul.f32 %v1762_v35, %v2039_v61 }
 0x109   : > { %v623_v57 = vmul.f32 %v615_v53, %v527_v34  ;;  %v608_v58 = vsub.f32 1.0, %v600_v54  ;;  %563 = vadd.xlane.f32.xlu0 %v548_v55 }
 0x10b   : > { %v616_v59 = vmul.f32 %v608_v58, %v2028_v51  ;;  %v2114_v22 = vadd.f32 %v635_v49, %v623_v57 }
 0x10d   : > { %v624_v62 = vmul.f32 %v616_v59, %v528_v45 }
 0x10f   : > { %v2116_v63 = vadd.f32 %v636_v56, %v624_v62 }
 0x170   : > { %v550_v3 = vpop.xlane.xlu0 %549 }
 0x171   : > { %v565_v4 = vmul.f32 0.25, %v550_v3  ;;  %v1679_v3 = vpack.c.bf16 %v2100_v43, %v2091_v2 }
 0x173   : > { %v577_v5 = vadd.f32 %v576_v1, %v565_v4 }
 0x175   : > { %v585_v6 = vsub.f32 0.0, %v577_v5 }
 0x177   : > { %647 = vperm.xlu1 %1746, %v585_v6  }
 0x17b   : > { %v552_v61 = vpop.xlane.xlu1 %551 }
 0x17c   : > { %v566_v7 = vmul.f32 0.25, %v552_v61  ;;  %v554_v18 = vpop.xlane.xlu0 %553 }
 0x17d   : > { %v567_v8 = vmul.f32 0.25, %v554_v18  ;;  %v1683_v18 = vpack.c.bf16 %v2110_v19, %v2098_v42 }
 0x17e   : > { %v578_v9 = vadd.f32 %v576_v1, %v566_v7 }
 0x17f   : > { %v579_v51 = vadd.f32 %v576_v1, %v567_v8 }
 0x180   : > { %v586_v16 = vsub.f32 0.0, %v578_v9  ;;  %v558_v23 = vpop.xlane.xlu1 %557  ;;  %v556_v25 = vpop.xlane.xlu0 %555 }
 0x181   : > { %v587_v26 = vsub.f32 0.0, %v579_v51  ;;  %v569_v28 = vmul.f32 0.25, %v558_v23  ;;  %v568_v60 = vmul.f32 0.25, %v556_v25 }
 0x182   : > { %652 = vperm.xlu0 %1745, %v586_v16   ;;  %v1687_v16 = vpack.c.bf16 %v2116_v63, %v2114_v22 }
 0x183   : > { %v581_v29 = vadd.f32 %v576_v1, %v569_v28  ;;  %v580_v14 = vadd.f32 %v576_v1, %v568_v60  ;;  %657 = vperm.xlu1 %1746, %v587_v26  }
 0x185   : > { %v589_v31 = vsub.f32 0.0, %v581_v29  ;;  %v588_v32 = vsub.f32 0.0, %v580_v14 }
 0x187   : > { %667 = vperm.xlu0 %1745, %v589_v31   ;;  %662 = vperm.xlu1 %1746, %v588_v32  }
 0x18e   : > { %v560_v34 = vpop.xlane.xlu0 %559 }
 0x18f   : > { %v570_v36 = vmul.f32 0.25, %v560_v34 }
 0x191   : > { %v582_v37 = vadd.f32 %v576_v1, %v570_v36 }
 0x192   : > { %v562_v38 = vpop.xlane.xlu1 %561 }
 0x193   : > { %v590_v40 = vsub.f32 0.0, %v582_v37  ;;  %v571_v41 = vmul.f32 0.25, %v562_v38 }
 0x195   : > { %v583_v44 = vadd.f32 %v576_v1, %v571_v41  ;;  %672 = vperm.xlu1 %1746, %v590_v40  }
 0x196   : > { %v564_v45 = vpop.xlane.xlu0 %563 }
 0x197   : > { %v591_v24 = vsub.f32 0.0, %v583_v44  ;;  %v572_v46 = vmul.f32 0.25, %v564_v45 }
 0x199   : > { %v584_v21 = vadd.f32 %v576_v1, %v572_v46  ;;  %677 = vperm.xlu0 %1745, %v591_v24  }
 0x19b   : > { %v592_v27 = vsub.f32 0.0, %v584_v21 }
 0x19d   : > { %682 = vperm.xlu1 %1746, %v592_v27  }
 0x1b7   : > { %773 = vxpose.xlu0.b32.start [1/8] (short) %v2062_v39, 128 }
 0x1bb   : > { %774 = vxpose.xlu0.b32.cont [2/8] (short) %v2089_v30, 128 }
 0x1bf   : > { %775 = vxpose.xlu0.b32.cont [3/8] (short) %v2091_v2, 128 }
 0x1c3   : > { %776 = vxpose.xlu0.b32.cont [4/8] (short) %v2100_v43, 128 }
 0x1c7   : > { %777 = vxpose.xlu0.b32.cont [5/8] (short) %v2098_v42, 128 }
 0x1cb   : > { %778 = vxpose.xlu0.b32.cont [6/8] (short) %v2110_v19, 128 }
 0x1cf   : > { %779 = vxpose.xlu0.b32.cont [7/8] (short) %v2114_v22, 128 }
 0x1d3   : > { %780 = vxpose.xlu0.b32.end [8/8] (short) %v2116_v63, 128 }
 0x1f6   : > { %v648_v33 = vpop.permute.xlu1 %647 }
 0x1f7   : > { %v689_v49 = vmul.f32 %v688_v20, %v648_v33 }
 0x1f9   : > { %v701_v50 = vadd.f32 %v700_v17, %v689_v49 }
 0x1fb   : > { %805 = vxpose.xlu1.b32.start [1/8] (short) %v701_v50, 128 }
 0x201   : > { %v653_v52 = vpop.permute.xlu0 %652 }
 0x202   : > { %v690_v35 = vmul.f32 %v688_v20, %v653_v52  ;;  %v658_v53 = vpop.permute.xlu1 %657 }
 0x203   : > { %v691_v55 = vmul.f32 %v688_v20, %v658_v53  ;;  %v710_v53 = vld [vmem:[#allocation2 + $0x8] sm:$0xff] }
 0x204   : > { %v702_v54 = vadd.f32 %v700_v17, %v690_v35  ;;  %v709_v35 = vld [vmem:[#allocation2] sm:$0xff] }
 0x205   : > { %v703_v59 = vadd.f32 %v700_v17, %v691_v55 }
 0x206   : > { %v663_v56 = vpop.permute.xlu1 %662  ;;  %806 = vxpose.xlu1.b32.cont [2/8] (short) %v702_v54, 128  ;;  %v1673_v57 = vpack.c.bf16 %v702_v54, %v701_v50  ;;  %v668_v15 = vpop.permute.xlu0 %667 }
 0x207   : > { %v692_v58 = vmul.f32 %v688_v20, %v663_v56  ;;  %v693_v1 = vmul.f32 %v688_v20, %v668_v15 }
 0x208   : > { %1674 = vmatprep.subr.bf16.mxu0 %v1673_v57  ;;  %1689 = vmatprep.subr.bf16.mxu1 %v1673_v57 }
 0x209   : > { %v704_v62 = vadd.f32 %v700_v17, %v692_v58  ;;  %1676 = vmatpush1.bf16.msra.mxu0 %v1675_v11  ;;  %1693 = vmatpush1.bf16.msra.mxu1 %v1675_v11  ;;  %v705_v4 = vadd.f32 %v700_v17, %v693_v1  ;;  %v711_v58 = vld [vmem:[#allocation2 + $0x10] sm:$0xff]  ;;  %v712_v11 = vld [vmem:[#allocation2 + $0x18] sm:$0xff]  ;;  %v713_v1 = vld [vmem:[#allocation2 + $0x20] sm:$0xff] }
 0x20a   : > { %807 = vxpose.xlu1.b32.cont [3/8] (short) %v703_v59, 128 }
 0x20b   : > { %v1677_v0 = vpack.c.bf16 %v704_v62, %v703_v59 }
 0x20d   : > { %1678 = vmatprep.subr.bf16.mxu0 %v1677_v0  ;;  %1690 = vmatprep.subr.bf16.mxu1 %v1677_v0 }
 0x20e   : > { %808 = vxpose.xlu1.b32.cont [4/8] (short) %v704_v62, 128  ;;  %1680 = vmatpush1.bf16.msra.mxu0 %v1679_v3 }
 0x20f   : > { %1694 = vmatpush1.bf16.msra.mxu1 %v1679_v3 }
 0x212   : > { %809 = vxpose.xlu1.b32.cont [5/8] (short) %v705_v4, 128 }
 0x214   : > { %v673_v39 = vpop.permute.xlu1 %672 }
 0x215   : > { %v694_v30 = vmul.f32 %v688_v20, %v673_v39 }
 0x217   : > { %v706_v5 = vadd.f32 %v700_v17, %v694_v30 }
 0x218   : > { %v678_v6 = vpop.permute.xlu0 %677 }
 0x219   : > { %v695_v61 = vmul.f32 %v688_v20, %v678_v6  ;;  %810 = vxpose.xlu1.b32.cont [6/8] (short) %v706_v5, 128  ;;  %v1681_v7 = vpack.c.bf16 %v706_v5, %v705_v4  ;;  %v715_v5 = vld [vmem:[#allocation2 + $0x30] sm:$0xff]  ;;  %v716_v6 = vld [vmem:[#allocation2 + $0x38] sm:$0xff] }
 0x21b   : > { %v707_v8 = vadd.f32 %v700_v17, %v695_v61  ;;  %1682 = vmatprep.subr.bf16.mxu0 %v1681_v7  ;;  %1691 = vmatprep.subr.bf16.mxu1 %v1681_v7 }
 0x21c   : > { %v683_v2 = vpop.permute.xlu1 %682  ;;  %1684 = vmatpush1.bf16.msra.mxu0 %v1683_v18  ;;  %1695 = vmatpush1.bf16.msra.mxu1 %v1683_v18 }
 0x21d   : > { %v696_v43 = vmul.f32 %v688_v20, %v683_v2  ;;  %811 = vxpose.xlu1.b32.cont [7/8] (short) %v707_v8, 128  ;;  %v717_v2 = vld [vmem:[#allocation2 + $0x40] sm:$0xff] }
 0x21f   : > { %v708_v9 = vadd.f32 %v700_v17, %v696_v43  ;;  %v718_v43 = vld [vmem:[#allocation2 + $0x48] sm:$0xff] }
 0x221   : > { %812 = vxpose.xlu1.b32.end [8/8] (short) %v708_v9, 128  ;;  %v1685_v51 = vpack.c.bf16 %v708_v9, %v707_v8 }
 0x223   : > { %1686 = vmatprep.subr.bf16.mxu0 %v1685_v51  ;;  %1692 = vmatprep.subr.bf16.mxu1 %v1685_v51 }
 0x224   : > { %1688 = vmatpush1.bf16.msra.mxu0 %v1687_v16  ;;  %1696 = vmatpush1.bf16.msra.mxu1 %v1687_v16 }
 0x237   : > { %v789_v42 = vpop.trf.xlu0 }
 0x238   : > { %1634 = vmatmul.mubr.msk.f32.vlgmr.msra.gmra.mrb[0].mxu0 %vm837_vm0, %v789_v42 }
 0x239   : > { %1004 = vmatprep.mubr.f32.mxu0 %v1868_v47 }
 0x23b   : > { %v790_v19 = vpop.trf.xlu0 }
 0x23c   : > { %1635 = vmatmul.mubr.msk.f32.gmra.mrb[2].mxu0 %vm837_vm0, %v790_v19  ;;  %v719_v19 = vld [vmem:[#allocation2 + $0x50] sm:$0xff] }
 0x23d   : > { %1010 = vmatprep.mubr.f32.mxu0 %v1868_v47 }
 0x23f   : > { %v791_v23 = vpop.trf.xlu0 }
 0x240   : > { %1636 = vmatmul.mubr.msk.f32.gmra.mrb[4].mxu0 %vm837_vm0, %v791_v23  ;;  %v720_v23 = vld [vmem:[#allocation2 + $0x58] sm:$0xff] }
 0x241   : > { %1016 = vmatprep.mubr.f32.mxu0 %v1868_v47 }
 0x243   : > { %v792_v22 = vpop.trf.xlu0 }
 0x244   : > { %1637 = vmatmul.mubr.msk.f32.gmra.mrb[6].mxu0 %vm837_vm0, %v792_v22 }
 0x245   : > { %1022 = vmatprep.mubr.f32.mxu0 %v1868_v47 }
 0x247   : > { %v793_v63 = vpop.trf.xlu0 }
 0x248   : > { %1638 = vmatmul.mubr.msk.f32.gmra.mrb[8].mxu0 %vm837_vm0, %v793_v63 }
 0x249   : > { %1028 = vmatprep.mubr.f32.mxu0 %v1868_v47 }
 0x24b   : > { %v794_v25 = vpop.trf.xlu0 }
 0x24c   : > { %1639 = vmatmul.mubr.msk.f32.gmra.mrb[10].mxu0 %vm837_vm0, %v794_v25 }
 0x24d   : > { %1034 = vmatprep.mubr.f32.mxu0 %v1868_v47 }
 0x24f   : > { %v795_v26 = vpop.trf.xlu0 }
 0x250   : > { %1640 = vmatmul.mubr.msk.f32.gmra.mrb[12].mxu0 %vm837_vm0, %v795_v26 }
 0x251   : > { %1040 = vmatprep.mubr.f32.mxu0 %v1868_v47 }
 0x253   : > { %v796_v28 = vpop.trf.xlu0 }
 0x254   : > { %1641 = vmatmul.mubr.msk.f32.gmra.mrb[14].mxu0 %vm837_vm0, %v796_v28  ;;  %v721_v28 = vld [vmem:[#allocation2 + $0x60] sm:$0xff] }
 0x255   : > { %1046 = vmatprep.mubr.f32.mxu0 %v1868_v47 }
 0x257   : > { %v797_v60 = vpop.trf.xlu0 }
 0x258   : > { %1642 = vmatmul.mubr.msk.f32.gmra.mrb[16].mxu0 %vm837_vm0, %v797_v60  ;;  %v722_v60 = vld [vmem:[#allocation2 + $0x68] sm:$0xff] }
 0x259   : > { %1052 = vmatprep.mubr.f32.mxu0 %v1868_v47 }
 0x25b   : > { %v798_v29 = vpop.trf.xlu0 }
 0x25c   : > { %1643 = vmatmul.mubr.msk.f32.gmra.mrb[18].mxu0 %vm837_vm0, %v798_v29 }
 0x25d   : > { %1058 = vmatprep.mubr.f32.mxu0 %v1868_v47 }
 0x25f   : > { %v799_v14 = vpop.trf.xlu0 }
 0x260   : > { %1644 = vmatmul.mubr.msk.f32.gmra.mrb[20].mxu0 %vm837_vm0, %v799_v14 }
 0x261   : > { %1064 = vmatprep.mubr.f32.mxu0 %v1868_v47 }
 0x263   : > { %v800_v31 = vpop.trf.xlu0 }
 0x264   : > { %1645 = vmatmul.mubr.msk.f32.gmra.mrb[22].mxu0 %vm837_vm0, %v800_v31 }
 0x265   : > { %1070 = vmatprep.mubr.f32.mxu0 %v1868_v47 }
 0x267   : > { %v801_v32 = vpop.trf.xlu0 }
 0x268   : > { %1646 = vmatmul.mubr.msk.f32.gmra.mrb[24].mxu0 %vm837_vm0, %v801_v32 }
 0x269   : > { %1076 = vmatprep.mubr.f32.mxu0 %v1868_v47 }
 0x26b   : > { %v802_v34 = vpop.trf.xlu0 }
 0x26c   : > { %1647 = vmatmul.mubr.msk.f32.gmra.mrb[26].mxu0 %vm837_vm0, %v802_v34  ;;  %v723_v34 = vld [vmem:[#allocation2 + $0x70] sm:$0xff] }
 0x26d   : > { %1082 = vmatprep.mubr.f32.mxu0 %v1868_v47 }
 0x26f   : > { %v803_v36 = vpop.trf.xlu0 }
 0x270   : > { %1648 = vmatmul.mubr.msk.f32.gmra.mrb[28].mxu0 %vm837_vm0, %v803_v36  ;;  %v724_v36 = vld [vmem:[#allocation2 + $0x78] sm:$0xff] }
 0x271   : > { %1088 = vmatprep.mubr.f32.mxu0 %v1868_v47 }
 0x273   : > { %v804_v37 = vpop.trf.xlu0 }
 0x274   : > { %1649 = vmatmul.mubr.msk.f32.gmra.mrb[30].mxu0 %vm837_vm0, %v804_v37 }
 0x285   : > { %v821_v38 = vpop.trf.xlu1 }
 0x286   : > { %1650 = vmatmul.mubr.msk.f32.vlgmr.msra.gmra.mrb[0].mxu1 %vm837_vm0, %v821_v38 }
 0x287   : > { %1100 = vmatprep.mubr.f32.mxu1 %v1868_v47 }
 0x289   : > { %v822_v40 = vpop.trf.xlu1 }
 0x28a   : > { %1651 = vmatmul.mubr.msk.f32.gmra.mrb[2].mxu1 %vm837_vm0, %v822_v40 }
 0x28b   : > { %1106 = vmatprep.mubr.f32.mxu1 %v1868_v47 }
 0x28d   : > { %v823_v41 = vpop.trf.xlu1 }
 0x28e   : > { %1652 = vmatmul.mubr.msk.f32.gmra.mrb[4].mxu1 %vm837_vm0, %v823_v41 }
 0x28f   : > { %1112 = vmatprep.mubr.f32.mxu1 %v1868_v47 }
 0x291   : > { %v824_v44 = vpop.trf.xlu1 }
 0x292   : > { %1653 = vmatmul.mubr.msk.f32.gmra.mrb[6].mxu1 %vm837_vm0, %v824_v44  ;;  %v725_v44 = vld [vmem:[#allocation2 + $0x80] sm:$0xff] }
 0x293   : > { %1118 = vmatprep.mubr.f32.mxu1 %v1868_v47 }
 0x295   : > { %v825_v45 = vpop.trf.xlu1 }
 0x296   : > { %1654 = vmatmul.mubr.msk.f32.gmra.mrb[8].mxu1 %vm837_vm0, %v825_v45  ;;  %v726_v45 = vld [vmem:[#allocation2 + $0x88] sm:$0xff] }
 0x297   : > { %1124 = vmatprep.mubr.f32.mxu1 %v1868_v47 }
 0x299   : > { %v826_v24 = vpop.trf.xlu1 }
 0x29a   : > { %1655 = vmatmul.mubr.msk.f32.gmra.mrb[10].mxu1 %vm837_vm0, %v826_v24 }
 0x29b   : > { %1130 = vmatprep.mubr.f32.mxu1 %v1868_v47 }
 0x29d   : > { %v827_v46 = vpop.trf.xlu1 }
 0x29e   : > { %1656 = vmatmul.mubr.msk.f32.gmra.mrb[12].mxu1 %vm837_vm0, %v827_v46 }
 0x29f   : > { %1136 = vmatprep.mubr.f32.mxu1 %v1868_v47 }
 0x2a1   : > { %v828_v21 = vpop.trf.xlu1 }
 0x2a2   : > { %1657 = vmatmul.mubr.msk.f32.gmra.mrb[14].mxu1 %vm837_vm0, %v828_v21 }
 0x2a3   : > { %1142 = vmatprep.mubr.f32.mxu1 %v1868_v47 }
 0x2a5   : > { %v829_v27 = vpop.trf.xlu1 }
 0x2a6   : > { %1658 = vmatmul.mubr.msk.f32.gmra.mrb[16].mxu1 %vm837_vm0, %v829_v27 }
 0x2a7   : > { %1148 = vmatprep.mubr.f32.mxu1 %v1868_v47 }
 0x2a9   : > { %v830_v48 = vpop.trf.xlu1 }
 0x2aa   : > { %1659 = vmatmul.mubr.msk.f32.gmra.mrb[18].mxu1 %vm837_vm0, %v830_v48  ;;  %v727_v48 = vld [vmem:[#allocation2 + $0x90] sm:$0xff] }
 0x2ab   : > { %1154 = vmatprep.mubr.f32.mxu1 %v1868_v47 }
 0x2ad   : > { %v831_v20 = vpop.trf.xlu1 }
 0x2ae   : > { %1660 = vmatmul.mubr.msk.f32.gmra.mrb[20].mxu1 %vm837_vm0, %v831_v20  ;;  %v728_v20 = vld [vmem:[#allocation2 + $0x98] sm:$0xff] }
 0x2af   : > { %1160 = vmatprep.mubr.f32.mxu1 %v1868_v47 }
 0x2b1   : > { %v832_v17 = vpop.trf.xlu1 }
 0x2b2   : > { %1661 = vmatmul.mubr.msk.f32.gmra.mrb[22].mxu1 %vm837_vm0, %v832_v17 }
 0x2b3   : > { %1166 = vmatprep.mubr.f32.mxu1 %v1868_v47 }
 0x2b5   : > { %v833_v33 = vpop.trf.xlu1 }
 0x2b6   : > { %1662 = vmatmul.mubr.msk.f32.gmra.mrb[24].mxu1 %vm837_vm0, %v833_v33 }
 0x2b7   : > { %1172 = vmatprep.mubr.f32.mxu1 %v1868_v47 }
 0x2b9   : > { %v834_v49 = vpop.trf.xlu1 }
 0x2ba   : > { %1663 = vmatmul.mubr.msk.f32.gmra.mrb[26].mxu1 %vm837_vm0, %v834_v49 }
 0x2bb   : > { %1178 = vmatprep.mubr.f32.mxu1 %v1868_v47 }
 0x2bd   : > { %v835_v50 = vpop.trf.xlu1 }
 0x2be   : > { %1664 = vmatmul.mubr.msk.f32.gmra.mrb[28].mxu1 %vm837_vm0, %v835_v50 }
 0x2bf   : > { %1184 = vmatprep.mubr.f32.mxu1 %v1868_v47  ;;  %v714_v47 = vld [vmem:[#allocation2 + $0x28] sm:$0xff] }
 0x2c1   : > { %v836_v52 = vpop.trf.xlu1 }
 0x2c2   : > { %1665 = vmatmul.mubr.msk.f32.gmra.mrb[30].mxu1 %vm837_vm0, %v836_v52  ;;  %v729_v52 = vld [vmem:[#allocation2 + $0xa0] sm:$0xff] }
 0x30b   : > { %v1000_v54 = vpop.f32.mrb[0].mxu0 }
 0x30c   : > { %v1191_v55 = vadd.f32 %v1000_v54, %v709_v35  ;;  %v1002_v56 = vpop.f32.mrb[1].mxu0  ;;  %v730_v35 = vld [vmem:[#allocation2 + $0xa8] sm:$0xff] }
 0x30d   : > { %v1192_v57 = vadd.f32 %v1002_v56, %v710_v53 }
 0x30e   : > { %1255 = vst [vmem:[#allocation2] sm:$0xff] %v1191_v55 }
 0x30f   : > { %1256 = vst [vmem:[#allocation2 + $0x8] sm:$0xff] %v1192_v57  ;;  %v1006_v59 = vpop.f32.mrb[2].mxu0  ;;  %v731_v57 = vld [vmem:[#allocation2 + $0xb0] sm:$0xff] }
 0x310   : > { %v1193_v15 = vadd.f32 %v1006_v59, %v711_v58  ;;  %v1008_v62 = vpop.f32.mrb[3].mxu0  ;;  %v732_v58 = vld [vmem:[#allocation2 + $0xb8] sm:$0xff] }
 0x311   : > { %v1194_v0 = vadd.f32 %v1008_v62, %v712_v11 }
 0x312   : > { %1257 = vst [vmem:[#allocation2 + $0x10] sm:$0xff] %v1193_v15 }
 0x313   : > { %1258 = vst [vmem:[#allocation2 + $0x18] sm:$0xff] %v1194_v0  ;;  %v1012_v3 = vpop.f32.mrb[4].mxu0  ;;  %v733_v0 = vld [vmem:[#allocation2 + $0xc0] sm:$0xff] }
 0x314   : > { %v1195_v4 = vadd.f32 %v1012_v3, %v713_v1  ;;  %v1014_v39 = vpop.f32.mrb[5].mxu0  ;;  %v734_v1 = vld [vmem:[#allocation2 + $0xc8] sm:$0xff] }
 0x315   : > { %v1196_v30 = vadd.f32 %v1014_v39, %v714_v47 }
 0x316   : > { %1259 = vst [vmem:[#allocation2 + $0x20] sm:$0xff] %v1195_v4 }
 0x317   : > { %1260 = vst [vmem:[#allocation2 + $0x28] sm:$0xff] %v1196_v30  ;;  %v1018_v61 = vpop.f32.mrb[6].mxu0  ;;  %v735_v30 = vld [vmem:[#allocation2 + $0xd0] sm:$0xff] }
 0x318   : > { %v1197_v7 = vadd.f32 %v1018_v61, %v715_v5  ;;  %v1020_v18 = vpop.f32.mrb[7].mxu0  ;;  %v736_v5 = vld [vmem:[#allocation2 + $0xd8] sm:$0xff] }
 0x319   : > { %v1198_v8 = vadd.f32 %v1020_v18, %v716_v6 }
 0x31a   : > { %1261 = vst [vmem:[#allocation2 + $0x30] sm:$0xff] %v1197_v7 }
 0x31b   : > { %1262 = vst [vmem:[#allocation2 + $0x38] sm:$0xff] %v1198_v8  ;;  %v1024_v9 = vpop.f32.mrb[8].mxu0  ;;  %v737_v8 = vld [vmem:[#allocation2 + $0xe0] sm:$0xff] }
 0x31c   : > { %v1199_v51 = vadd.f32 %v1024_v9, %v717_v2  ;;  %v1026_v16 = vpop.f32.mrb[9].mxu0  ;;  %v738_v2 = vld [vmem:[#allocation2 + $0xe8] sm:$0xff] }
 0x31d   : > { %v1200_v42 = vadd.f32 %v1026_v16, %v718_v43 }
 0x31e   : > { %1263 = vst [vmem:[#allocation2 + $0x40] sm:$0xff] %v1199_v51 }
 0x31f   : > { %1264 = vst [vmem:[#allocation2 + $0x48] sm:$0xff] %v1200_v42  ;;  %v1030_v22 = vpop.f32.mrb[10].mxu0  ;;  %v739_v42 = vld [vmem:[#allocation2 + $0xf0] sm:$0xff] }
 0x320   : > { %v1201_v63 = vadd.f32 %v1030_v22, %v719_v19  ;;  %v1032_v25 = vpop.f32.mrb[11].mxu0  ;;  %v740_v19 = vld [vmem:[#allocation2 + $0xf8] sm:$0xff] }
 0x321   : > { %v1202_v26 = vadd.f32 %v1032_v25, %v720_v23 }
 0x322   : > { %1265 = vst [vmem:[#allocation2 + $0x50] sm:$0xff] %v1201_v63 }
 0x323   : > { %1266 = vst [vmem:[#allocation2 + $0x58] sm:$0xff] %v1202_v26  ;;  %v1036_v29 = vpop.f32.mrb[12].mxu0  ;;  %v741_v26 = vld [vmem:[#allocation2 + $0x100] sm:$0xff] }
 0x324   : > { %v1203_v14 = vadd.f32 %v1036_v29, %v721_v28  ;;  %v1038_v31 = vpop.f32.mrb[13].mxu0  ;;  %v742_v28 = vld [vmem:[#allocation2 + $0x108] sm:$0xff] }
 0x325   : > { %v1204_v32 = vadd.f32 %v1038_v31, %v722_v60 }
 0x326   : > { %1267 = vst [vmem:[#allocation2 + $0x60] sm:$0xff] %v1203_v14 }
 0x327   : > { %1268 = vst [vmem:[#allocation2 + $0x68] sm:$0xff] %v1204_v32  ;;  %v1042_v37 = vpop.f32.mrb[14].mxu0  ;;  %v743_v32 = vld [vmem:[#allocation2 + $0x110] sm:$0xff] }
 0x328   : > { %v1205_v38 = vadd.f32 %v1042_v37, %v723_v34  ;;  %v1044_v40 = vpop.f32.mrb[15].mxu0  ;;  %v744_v34 = vld [vmem:[#allocation2 + $0x118] sm:$0xff] }
 0x329   : > { %v1206_v41 = vadd.f32 %v1044_v40, %v724_v36 }
 0x32a   : > { %1269 = vst [vmem:[#allocation2 + $0x70] sm:$0xff] %v1205_v38 }
 0x32b   : > { %1270 = vst [vmem:[#allocation2 + $0x78] sm:$0xff] %v1206_v41  ;;  %v1048_v24 = vpop.f32.mrb[16].mxu0  ;;  %v745_v41 = vld [vmem:[#allocation2 + $0x120] sm:$0xff] }
 0x32c   : > { %v1207_v46 = vadd.f32 %v1048_v24, %v725_v44  ;;  %v1050_v21 = vpop.f32.mrb[17].mxu0  ;;  %v746_v44 = vld [vmem:[#allocation2 + $0x128] sm:$0xff] }
 0x32d   : > { %v1208_v27 = vadd.f32 %v1050_v21, %v726_v45 }
 0x32e   : > { %1271 = vst [vmem:[#allocation2 + $0x80] sm:$0xff] %v1207_v46 }
 0x32f   : > { %1272 = vst [vmem:[#allocation2 + $0x88] sm:$0xff] %v1208_v27  ;;  %v1054_v17 = vpop.f32.mrb[18].mxu0  ;;  %v747_v27 = vld [vmem:[#allocation2 + $0x130] sm:$0xff] }
 0x330   : > { %v1209_v33 = vadd.f32 %v1054_v17, %v727_v48  ;;  %v1056_v49 = vpop.f32.mrb[19].mxu0  ;;  %v748_v48 = vld [vmem:[#allocation2 + $0x138] sm:$0xff] }
 0x331   : > { %v1210_v50 = vadd.f32 %v1056_v49, %v728_v20 }
 0x332   : > { %1273 = vst [vmem:[#allocation2 + $0x90] sm:$0xff] %v1209_v33 }
 0x333   : > { %1274 = vst [vmem:[#allocation2 + $0x98] sm:$0xff] %v1210_v50  ;;  %v1060_v53 = vpop.f32.mrb[20].mxu0  ;;  %v749_v50 = vld [vmem:[#allocation2 + $0x140] sm:$0xff] }
 0x334   : > { %v1211_v54 = vadd.f32 %v1060_v53, %v729_v52  ;;  %v1062_v55 = vpop.f32.mrb[21].mxu0  ;;  %v750_v52 = vld [vmem:[#allocation2 + $0x148] sm:$0xff] }
 0x335   : > { %v1212_v56 = vadd.f32 %v1062_v55, %v730_v35 }
 0x336   : > { %1275 = vst [vmem:[#allocation2 + $0xa0] sm:$0xff] %v1211_v54 }
 0x337   : > { %1276 = vst [vmem:[#allocation2 + $0xa8] sm:$0xff] %v1212_v56  ;;  %v1066_v11 = vpop.f32.mrb[22].mxu0  ;;  %v751_v56 = vld [vmem:[#allocation2 + $0x150] sm:$0xff] }
 0x338   : > { %v1213_v59 = vadd.f32 %v1066_v11, %v731_v57  ;;  %v1068_v15 = vpop.f32.mrb[23].mxu0  ;;  %v752_v57 = vld [vmem:[#allocation2 + $0x158] sm:$0xff] }
 0x339   : > { %v1214_v62 = vadd.f32 %v1068_v15, %v732_v58 }
 0x33a   : > { %1277 = vst [vmem:[#allocation2 + $0xb0] sm:$0xff] %v1213_v59 }
 0x33b   : > { %1278 = vst [vmem:[#allocation2 + $0xb8] sm:$0xff] %v1214_v62  ;;  %v1072_v47 = vpop.f32.mrb[24].mxu0  ;;  %v753_v62 = vld [vmem:[#allocation2 + $0x160] sm:$0xff] }
 0x33c   : > { %v1215_v3 = vadd.f32 %v1072_v47, %v733_v0  ;;  %v1074_v4 = vpop.f32.mrb[25].mxu0  ;;  %v754_v0 = vld [vmem:[#allocation2 + $0x168] sm:$0xff] }
 0x33d   : > { %v1216_v39 = vadd.f32 %v1074_v4, %v734_v1 }
 0x33e   : > { %1279 = vst [vmem:[#allocation2 + $0xc0] sm:$0xff] %v1215_v3 }
 0x33f   : > { %1280 = vst [vmem:[#allocation2 + $0xc8] sm:$0xff] %v1216_v39  ;;  %v1078_v6 = vpop.f32.mrb[26].mxu0  ;;  %v755_v39 = vld [vmem:[#allocation2 + $0x170] sm:$0xff] }
 0x340   : > { %v1217_v61 = vadd.f32 %v1078_v6, %v735_v30  ;;  %v1080_v7 = vpop.f32.mrb[27].mxu0  ;;  %v756_v30 = vld [vmem:[#allocation2 + $0x178] sm:$0xff] }
 0x341   : > { %v1218_v18 = vadd.f32 %v1080_v7, %v736_v5 }
 0x342   : > { %1281 = vst [vmem:[#allocation2 + $0xd0] sm:$0xff] %v1217_v61 }
 0x343   : > { %1282 = vst [vmem:[#allocation2 + $0xd8] sm:$0xff] %v1218_v18  ;;  %v1084_v43 = vpop.f32.mrb[28].mxu0  ;;  %v757_v18 = vld [vmem:[#allocation2 + $0x180] sm:$0xff] }
 0x344   : > { %v1219_v9 = vadd.f32 %v1084_v43, %v737_v8  ;;  %v1086_v51 = vpop.f32.mrb[29].mxu0  ;;  %v758_v8 = vld [vmem:[#allocation2 + $0x188] sm:$0xff] }
 0x345   : > { %v1220_v16 = vadd.f32 %v1086_v51, %v738_v2 }
 0x346   : > { %1283 = vst [vmem:[#allocation2 + $0xe0] sm:$0xff] %v1219_v9 }
 0x347   : > { %1284 = vst [vmem:[#allocation2 + $0xe8] sm:$0xff] %v1220_v16  ;;  %v1090_v23 = vpop.f32.mrb[30].mxu0  ;;  %v759_v16 = vld [vmem:[#allocation2 + $0x190] sm:$0xff] }
 0x348   : > { %v1221_v22 = vadd.f32 %v1090_v23, %v739_v42  ;;  %v1092_v63 = vpop.f32.mrb[31].mxu0  ;;  %v760_v42 = vld [vmem:[#allocation2 + $0x198] sm:$0xff] }
 0x349   : > { %v1222_v25 = vadd.f32 %v1092_v63, %v740_v19 }
 0x34a   : > { %1285 = vst [vmem:[#allocation2 + $0xf0] sm:$0xff] %v1221_v22 }
 0x34b   : > { %1286 = vst [vmem:[#allocation2 + $0xf8] sm:$0xff] %v1222_v25  ;;  %v761_v25 = vld [vmem:[#allocation2 + $0x1a0] sm:$0xff] }
 0x359   : > { %v1096_v60 = vpop.f32.mrb[0].mxu1 }
 0x35a   : > { %v1223_v29 = vadd.f32 %v1096_v60, %v741_v26  ;;  %v1098_v14 = vpop.f32.mrb[1].mxu1  ;;  %v762_v26 = vld [vmem:[#allocation2 + $0x1a8] sm:$0xff] }
 0x35b   : > { %v1224_v31 = vadd.f32 %v1098_v14, %v742_v28 }
 0x35c   : > { %1287 = vst [vmem:[#allocation2 + $0x100] sm:$0xff] %v1223_v29 }
 0x35d   : > { %1288 = vst [vmem:[#allocation2 + $0x108] sm:$0xff] %v1224_v31  ;;  %v1102_v36 = vpop.f32.mrb[2].mxu1  ;;  %v763_v31 = vld [vmem:[#allocation2 + $0x1b0] sm:$0xff] }
 0x35e   : > { %v1225_v37 = vadd.f32 %v1102_v36, %v743_v32  ;;  %v1104_v38 = vpop.f32.mrb[3].mxu1  ;;  %v764_v32 = vld [vmem:[#allocation2 + $0x1b8] sm:$0xff] }
 0x35f   : > { %v1226_v40 = vadd.f32 %v1104_v38, %v744_v34 }
 0x360   : > { %1289 = vst [vmem:[#allocation2 + $0x110] sm:$0xff] %v1225_v37 }
 0x361   : > { %1290 = vst [vmem:[#allocation2 + $0x118] sm:$0xff] %v1226_v40  ;;  %v1108_v45 = vpop.f32.mrb[4].mxu1  ;;  %v765_v40 = vld [vmem:[#allocation2 + $0x1c0] sm:$0xff] }
 0x362   : > { %v1227_v24 = vadd.f32 %v1108_v45, %v745_v41  ;;  %v1110_v46 = vpop.f32.mrb[5].mxu1  ;;  %v766_v41 = vld [vmem:[#allocation2 + $0x1c8] sm:$0xff] }
 0x363   : > { %v1228_v21 = vadd.f32 %v1110_v46, %v746_v44 }
 0x364   : > { %1291 = vst [vmem:[#allocation2 + $0x120] sm:$0xff] %v1227_v24 }
 0x365   : > { %1292 = vst [vmem:[#allocation2 + $0x128] sm:$0xff] %v1228_v21  ;;  %v1114_v20 = vpop.f32.mrb[6].mxu1  ;;  %v767_v21 = vld [vmem:[#allocation2 + $0x1d0] sm:$0xff] }
 0x366   : > { %v1229_v17 = vadd.f32 %v1114_v20, %v747_v27  ;;  %v1116_v33 = vpop.f32.mrb[7].mxu1  ;;  %v768_v27 = vld [vmem:[#allocation2 + $0x1d8] sm:$0xff] }
 0x367   : > { %v1230_v49 = vadd.f32 %v1116_v33, %v748_v48 }
 0x368   : > { %1293 = vst [vmem:[#allocation2 + $0x130] sm:$0xff] %v1229_v17 }
 0x369   : > { %1294 = vst [vmem:[#allocation2 + $0x138] sm:$0xff] %v1230_v49  ;;  %v1120_v35 = vpop.f32.mrb[8].mxu1  ;;  %v769_v49 = vld [vmem:[#allocation2 + $0x1e0] sm:$0xff] }
 0x36a   : > { %v1231_v53 = vadd.f32 %v1120_v35, %v749_v50  ;;  %v1122_v54 = vpop.f32.mrb[9].mxu1  ;;  %v770_v50 = vld [vmem:[#allocation2 + $0x1e8] sm:$0xff] }
 0x36b   : > { %v1232_v55 = vadd.f32 %v1122_v54, %v750_v52 }
 0x36c   : > { %1295 = vst [vmem:[#allocation2 + $0x140] sm:$0xff] %v1231_v53 }
 0x36d   : > { %1296 = vst [vmem:[#allocation2 + $0x148] sm:$0xff] %v1232_v55  ;;  %v1126_v58 = vpop.f32.mrb[10].mxu1  ;;  %v771_v55 = vld [vmem:[#allocation2 + $0x1f0] sm:$0xff] }
 0x36e   : > { %v1233_v11 = vadd.f32 %v1126_v58, %v751_v56  ;;  %v1128_v59 = vpop.f32.mrb[11].mxu1  ;;  %v772_v56 = vld [vmem:[#allocation2 + $0x1f8] sm:$0xff] }
 0x36f   : > { %v1234_v15 = vadd.f32 %v1128_v59, %v752_v57 }
 0x370   : > { %1297 = vst [vmem:[#allocation2 + $0x150] sm:$0xff] %v1233_v11 }
 0x371   : > { %1298 = vst [vmem:[#allocation2 + $0x158] sm:$0xff] %v1234_v15  ;;  %v1132_v1 = vpop.f32.mrb[12].mxu1  ;;  %v1324_v15 = vld [vmem:[#allocation3 + $0x101] ss:$8 sm:$0x3] (!%p1666_p4) }
 0x372   : > { %v1235_v47 = vadd.f32 %v1132_v1, %v753_v62  ;;  %v1134_v3 = vpop.f32.mrb[13].mxu1  ;;  %v1361_v62 = vld [vmem:[#allocation2 + $0x100] sm:$0xff] (!%p1666_p4)  ;;  %v2204_v1 = vsub.f32 (!%p1666_p4), 1.0, %v1324_v15 }
 0x373   : > { %v1236_v4 = vadd.f32 %v1134_v3, %v754_v0  ;;  %v1362_v0 = vld [vmem:[#allocation2 + $0x108] sm:$0xff] (!%p1666_p4)  ;;  %v1329_v3 = vld [vmem:[#allocation2] sm:$0xff] (!%p1666_p4) }
 0x374   : > { %1299 = vst [vmem:[#allocation2 + $0x160] sm:$0xff] %v1235_v47  ;;  %v1869_v47 = vmov (!%p1666_p4), 0.0  }
 0x375   : > { %1300 = vst [vmem:[#allocation2 + $0x168] sm:$0xff] %v1236_v4  ;;  %v1138_v5 = vpop.f32.mrb[14].mxu1  ;;  %1539 = vst [vmem:[#allocation7] sm:$0xff] (!%p1666_p4), %v1869_v47  ;;  %v1330_v4 = vld [vmem:[#allocation2 + $0x8] sm:$0xff] (!%p1666_p4) }
 0x376   : > { %v1237_v6 = vadd.f32 %v1138_v5, %v755_v39  ;;  %v1140_v61 = vpop.f32.mrb[15].mxu1  ;;  %1540 = vst [vmem:[#allocation7 + $0x8] sm:$0xff] (!%p1666_p4), %v1869_v47  ;;  %v1331_v39 = vld [vmem:[#allocation2 + $0x10] sm:$0xff] (!%p1666_p4)  ;;  %v1333_v5 = vld [vmem:[#allocation2 + $0x20] sm:$0xff] (!%p1666_p4)  ;;  %v1360_v47 = vld [vmem:[#allocation2 + $0xf8] sm:$0xff] (!%p1666_p4) }
 0x377   : > { %v1238_v7 = vadd.f32 %v1140_v61, %v756_v30  ;;  %v1332_v30 = vld [vmem:[#allocation2 + $0x18] sm:$0xff] (!%p1666_p4)  ;;  %v2208_v61 = vrot.slane (!%p1666_p4), %v2204_v1, %v1973_v13 }
 0x378   : > { %1301 = vst [vmem:[#allocation2 + $0x170] sm:$0xff] %v1237_v6  ;;  %v1334_v6 = vld [vmem:[#allocation2 + $0x28] sm:$0xff] (!%p1666_p4) }
 0x379   : > { %1302 = vst [vmem:[#allocation2 + $0x178] sm:$0xff] %v1238_v7  ;;  %v1144_v2 = vpop.f32.mrb[16].mxu1  ;;  %v2212_v7 = vrot.slane (!%p1666_p4), %v2204_v1, %v1970_v12  ;;  %v1408_v10 = vmul.f32 (!%p1666_p4), %v2208_v61, %v1333_v5 }
 0x37a   : > { %v1239_v43 = vadd.f32 %v1144_v2, %v757_v18  ;;  %v1146_v9 = vpop.f32.mrb[17].mxu1  ;;  %v1335_v18 = vld [vmem:[#allocation2 + $0x30] sm:$0xff] (!%p1666_p4)  ;;  %v1337_v2 = vld [vmem:[#allocation2 + $0x40] sm:$0xff] (!%p1666_p4) }
 0x37b   : > { %v1240_v51 = vadd.f32 %v1146_v9, %v758_v8  ;;  %v1336_v8 = vld [vmem:[#allocation2 + $0x38] sm:$0xff] (!%p1666_p4)  ;;  %v1339_v9 = vld [vmem:[#allocation2 + $0x50] sm:$0xff] (!%p1666_p4)  ;;  %v1437_v13 = vmul.f32 (!%p1666_p4), %v2212_v7, %v1362_v0  ;;  %v1405_v12 = vmul.f32 (!%p1666_p4), %v2212_v7, %v1330_v4  ;;  %1472 = vst [vmem:[#allocation6 + $0x20] sm:$0xff] (!%p1666_p4), %v1408_v10 }
 0x37c   : > { %1303 = vst [vmem:[#allocation2 + $0x180] sm:$0xff] %v1239_v43  ;;  %v1338_v43 = vld [vmem:[#allocation2 + $0x48] sm:$0xff] (!%p1666_p4)  ;;  %v1359_v0 = vld [vmem:[#allocation2 + $0xf0] sm:$0xff] (!%p1666_p4)  ;;  %v1372_v10 = vld [vmem:[#allocation2 + $0x158] sm:$0xff] (!%p1666_p4) }
 0x37d   : > { %1304 = vst [vmem:[#allocation2 + $0x188] sm:$0xff] %v1240_v51  ;;  %v1150_v19 = vpop.f32.mrb[18].mxu1  ;;  %v1340_v51 = vld [vmem:[#allocation2 + $0x58] sm:$0xff] (!%p1666_p4)  ;;  %1501 = vst [vmem:[#allocation6 + $0x108] sm:$0xff] (!%p1666_p4), %v1437_v13 }
 0x37e   : > { %v1241_v23 = vadd.f32 %v1150_v19, %v759_v16  ;;  %v1152_v22 = vpop.f32.mrb[19].mxu1  ;;  %v1404_v19 = vmul.f32 (!%p1666_p4), %v2208_v61, %v1329_v3  ;;  %1469 = vst [vmem:[#allocation6 + $0x8] sm:$0xff] (!%p1666_p4), %v1405_v12  ;;  %v1363_v3 = vld [vmem:[#allocation2 + $0x110] sm:$0xff] (!%p1666_p4)  ;;  %v1368_v13 = vld [vmem:[#allocation2 + $0x138] sm:$0xff] (!%p1666_p4) }
 0x37f   : > { %v1242_v63 = vadd.f32 %v1152_v22, %v760_v42  ;;  %v1436_v42 = vmul.f32 (!%p1666_p4), %v2208_v61, %v1361_v62  ;;  %v1342_v22 = vld [vmem:[#allocation2 + $0x68] sm:$0xff] (!%p1666_p4) }
 0x380   : > { %1305 = vst [vmem:[#allocation2 + $0x190] sm:$0xff] %v1241_v23  ;;  %v1341_v23 = vld [vmem:[#allocation2 + $0x60] sm:$0xff] (!%p1666_p4)  ;;  %1468 = vst [vmem:[#allocation6] sm:$0xff] (!%p1666_p4), %v1404_v19 }
 0x381   : > { %1306 = vst [vmem:[#allocation2 + $0x198] sm:$0xff] %v1242_v63  ;;  %v1156_v28 = vpop.f32.mrb[20].mxu1  ;;  %v1343_v63 = vld [vmem:[#allocation2 + $0x70] sm:$0xff] (!%p1666_p4)  ;;  %1500 = vst [vmem:[#allocation6 + $0x100] sm:$0xff] (!%p1666_p4), %v1436_v42  ;;  %v1369_v19 = vld [vmem:[#allocation2 + $0x140] sm:$0xff] (!%p1666_p4) }
 0x382   : > { %v1243_v60 = vadd.f32 %v1156_v28, %v761_v25  ;;  %v1158_v29 = vpop.f32.mrb[21].mxu1  ;;  %v1406_v25 = vmul.f32 (!%p1666_p4), %v2208_v61, %v1331_v39  ;;  %v1409_v28 = vmul.f32 (!%p1666_p4), %v2212_v7, %v1334_v6  ;;  %1537 = vst.msk [vmem:[#allocation6 + $0x101] ss:$8 sm:$0x3] (!%p1666_p4), %vm2215_vm1, %v1324_v15  ;;  %v1364_v6 = vld [vmem:[#allocation2 + $0x118] sm:$0xff] (!%p1666_p4)  ;;  %v1367_v42 = vld [vmem:[#allocation2 + $0x130] sm:$0xff] (!%p1666_p4) }
 0x383   : > { %v1244_v14 = vadd.f32 %v1158_v29, %v762_v26  ;;  %v1407_v26 = vmul.f32 (!%p1666_p4), %v2212_v7, %v1332_v30  ;;  %v1345_v29 = vld [vmem:[#allocation2 + $0x80] sm:$0xff] (!%p1666_p4) }
 0x384   : > { %1307 = vst [vmem:[#allocation2 + $0x1a0] sm:$0xff] %v1243_v60  ;;  %v1344_v60 = vld [vmem:[#allocation2 + $0x78] sm:$0xff] (!%p1666_p4)  ;;  %1470 = vst [vmem:[#allocation6 + $0x10] sm:$0xff] (!%p1666_p4), %v1406_v25  ;;  %v1370_v25 = vld [vmem:[#allocation2 + $0x148] sm:$0xff] (!%p1666_p4) }
 0x385   : > { %1308 = vst [vmem:[#allocation2 + $0x1a8] sm:$0xff] %v1244_v14  ;;  %v1162_v34 = vpop.f32.mrb[22].mxu1  ;;  %v1346_v14 = vld [vmem:[#allocation2 + $0x88] sm:$0xff] (!%p1666_p4)  ;;  %1471 = vst [vmem:[#allocation6 + $0x18] sm:$0xff] (!%p1666_p4), %v1407_v26  ;;  %v1371_v26 = vld [vmem:[#allocation2 + $0x150] sm:$0xff] (!%p1666_p4) }
 0x386   : > { %v1245_v36 = vadd.f32 %v1162_v34, %v763_v31  ;;  %v1164_v37 = vpop.f32.mrb[23].mxu1  ;;  %v1410_v31 = vmul.f32 (!%p1666_p4), %v2208_v61, %v1335_v18  ;;  %v1412_v34 = vmul.f32 (!%p1666_p4), %v2208_v61, %v1337_v2  ;;  %1473 = vst [vmem:[#allocation6 + $0x28] sm:$0xff] (!%p1666_p4), %v1409_v28  ;;  %v1365_v18 = vld [vmem:[#allocation2 + $0x120] sm:$0xff] (!%p1666_p4)  ;;  %v1434_v2 = vmul.f32 (!%p1666_p4), %v2208_v61, %v1359_v0 }
 0x387   : > { %v1246_v38 = vadd.f32 %v1164_v37, %v764_v32  ;;  %v1411_v32 = vmul.f32 (!%p1666_p4), %v2212_v7, %v1336_v8  ;;  %v1347_v37 = vld [vmem:[#allocation2 + $0x90] sm:$0xff] (!%p1666_p4)  ;;  %v1366_v8 = vld [vmem:[#allocation2 + $0x128] sm:$0xff] (!%p1666_p4)  ;;  %v1440_v12 = vmul.f32 (!%p1666_p4), %v2208_v61, %v1365_v18  ;;  %v1444_v28 = vmul.f32 (!%p1666_p4), %v2208_v61, %v1369_v19 }
 0x388   : > { %1309 = vst [vmem:[#allocation2 + $0x1b0] sm:$0xff] %v1245_v36  ;;  %v1413_v36 = vmul.f32 (!%p1666_p4), %v2212_v7, %v1338_v43  ;;  %1474 = vst [vmem:[#allocation6 + $0x30] sm:$0xff] (!%p1666_p4), %v1410_v31  ;;  %v1435_v43 = vmul.f32 (!%p1666_p4), %v2212_v7, %v1360_v47  ;;  %v1373_v31 = vld [vmem:[#allocation2 + $0x160] sm:$0xff] (!%p1666_p4) }
 0x389   : > { %1310 = vst [vmem:[#allocation2 + $0x1b8] sm:$0xff] %v1246_v38  ;;  %v1168_v44 = vpop.f32.mrb[24].mxu1  ;;  %v1348_v38 = vld [vmem:[#allocation2 + $0x98] sm:$0xff] (!%p1666_p4)  ;;  %1475 = vst [vmem:[#allocation6 + $0x38] sm:$0xff] (!%p1666_p4), %v1411_v32  ;;  %v1374_v32 = vld [vmem:[#allocation2 + $0x168] sm:$0xff] (!%p1666_p4) }
 0x38a   : > { %v1247_v45 = vadd.f32 %v1168_v44, %v765_v40  ;;  %v1170_v24 = vpop.f32.mrb[25].mxu1  ;;  %v1349_v40 = vld [vmem:[#allocation2 + $0xa0] sm:$0xff] (!%p1666_p4)  ;;  %v1415_v44 = vmul.f32 (!%p1666_p4), %v2212_v7, %v1340_v51  ;;  %1476 = vst [vmem:[#allocation6 + $0x40] sm:$0xff] (!%p1666_p4), %v1412_v34  ;;  %1477 = vst [vmem:[#allocation6 + $0x48] sm:$0xff] (!%p1666_p4), %v1413_v36  ;;  %v1439_v51 = vmul.f32 (!%p1666_p4), %v2212_v7, %v1364_v6  ;;  %v1375_v34 = vld [vmem:[#allocation2 + $0x170] sm:$0xff] (!%p1666_p4) }
 0x38b   : > { %v1248_v46 = vadd.f32 %v1170_v24, %v766_v41  ;;  %v1414_v41 = vmul.f32 (!%p1666_p4), %v2208_v61, %v1339_v9  ;;  %v1417_v24 = vmul.f32 (!%p1666_p4), %v2212_v7, %v1342_v22  ;;  %v1438_v9 = vmul.f32 (!%p1666_p4), %v2208_v61, %v1363_v3  ;;  %1498 = vst [vmem:[#allocation6 + $0xf0] sm:$0xff] (!%p1666_p4), %v1434_v2 }
 0x38c   : > { %1311 = vst [vmem:[#allocation2 + $0x1c0] sm:$0xff] %v1247_v45  ;;  %v1416_v45 = vmul.f32 (!%p1666_p4), %v2208_v61, %v1341_v23  ;;  %1479 = vst [vmem:[#allocation6 + $0x58] sm:$0xff] (!%p1666_p4), %v1415_v44  ;;  %v1441_v23 = vmul.f32 (!%p1666_p4), %v2212_v7, %v1366_v8  ;;  %v1442_v22 = vmul.f32 (!%p1666_p4), %v2208_v61, %v1367_v42  ;;  %v1378_v44 = vld [vmem:[#allocation2 + $0x188] sm:$0xff] (!%p1666_p4) }
 0x38d   : > { %1312 = vst [vmem:[#allocation2 + $0x1c8] sm:$0xff] %v1248_v46  ;;  %v1174_v48 = vpop.f32.mrb[26].mxu1  ;;  %v1350_v46 = vld [vmem:[#allocation2 + $0xa8] sm:$0xff] (!%p1666_p4)  ;;  %1478 = vst [vmem:[#allocation6 + $0x50] sm:$0xff] (!%p1666_p4), %v1414_v41  ;;  %v1448_v36 = vmul.f32 (!%p1666_p4), %v2208_v61, %v1373_v31  ;;  %v1377_v41 = vld [vmem:[#allocation2 + $0x180] sm:$0xff] (!%p1666_p4) }
 0x38e   : > { %v1249_v20 = vadd.f32 %v1174_v48, %v767_v21  ;;  %v1176_v17 = vpop.f32.mrb[27].mxu1  ;;  %v1351_v21 = vld [vmem:[#allocation2 + $0xb0] sm:$0xff] (!%p1666_p4)  ;;  %v1418_v48 = vmul.f32 (!%p1666_p4), %v2208_v61, %v1343_v63  ;;  %1480 = vst [vmem:[#allocation6 + $0x60] sm:$0xff] (!%p1666_p4), %v1416_v45  ;;  %1481 = vst [vmem:[#allocation6 + $0x68] sm:$0xff] (!%p1666_p4), %v1417_v24  ;;  %v1443_v63 = vmul.f32 (!%p1666_p4), %v2212_v7, %v1368_v13 }
 0x38f   : > { %v1250_v33 = vadd.f32 %v1176_v17, %v768_v27  ;;  %v1352_v27 = vld [vmem:[#allocation2 + $0xb8] sm:$0xff] (!%p1666_p4)  ;;  %v1420_v17 = vmul.f32 (!%p1666_p4), %v2208_v61, %v1345_v29  ;;  %1499 = vst [vmem:[#allocation6 + $0xf8] sm:$0xff] (!%p1666_p4), %v1435_v43  ;;  %1502 = vst [vmem:[#allocation6 + $0x110] sm:$0xff] (!%p1666_p4), %v1438_v9  ;;  %v1446_v29 = vmul.f32 (!%p1666_p4), %v2208_v61, %v1371_v26 }
 0x390   : > { %1313 = vst [vmem:[#allocation2 + $0x1d0] sm:$0xff] %v1249_v20  ;;  %v1419_v20 = vmul.f32 (!%p1666_p4), %v2212_v7, %v1344_v60  ;;  %1482 = vst [vmem:[#allocation6 + $0x70] sm:$0xff] (!%p1666_p4), %v1418_v48  ;;  %v1445_v60 = vmul.f32 (!%p1666_p4), %v2212_v7, %v1370_v25  ;;  %v1452_v24 = vmul.f32 (!%p1666_p4), %v2208_v61, %v1377_v41  ;;  %v1381_v48 = vld [vmem:[#allocation2 + $0x1a0] sm:$0xff] (!%p1666_p4) }
 0x391   : > { %1314 = vst [vmem:[#allocation2 + $0x1d8] sm:$0xff] %v1250_v33  ;;  %v1180_v52 = vpop.f32.mrb[28].mxu1  ;;  %v1421_v33 = vmul.f32 (!%p1666_p4), %v2212_v7, %v1346_v14  ;;  %1484 = vst [vmem:[#allocation6 + $0x80] sm:$0xff] (!%p1666_p4), %v1420_v17  ;;  %v1447_v14 = vmul.f32 (!%p1666_p4), %v2212_v7, %v1372_v10 }
 0x392   : > { %v1251_v35 = vadd.f32 %v1180_v52, %v769_v49  ;;  %v1182_v53 = vpop.f32.mrb[29].mxu1  ;;  %v1353_v49 = vld [vmem:[#allocation2 + $0xc0] sm:$0xff] (!%p1666_p4)  ;;  %v1355_v52 = vld [vmem:[#allocation2 + $0xd0] sm:$0xff] (!%p1666_p4)  ;;  %1483 = vst [vmem:[#allocation6 + $0x78] sm:$0xff] (!%p1666_p4), %v1419_v20  ;;  %1503 = vst [vmem:[#allocation6 + $0x118] sm:$0xff] (!%p1666_p4), %v1439_v51 }
 0x393   : > { %v1252_v54 = vadd.f32 %v1182_v53, %v770_v50  ;;  %1322 = sbr.rel (%p1666_p4) target bundleno = 939 (0x3ab), region = 48  ;;  %v1354_v50 = vld [vmem:[#allocation2 + $0xc8] sm:$0xff] (!%p1666_p4)  ;;  %v1423_v53 = vmul.f32 (!%p1666_p4), %v2212_v7, %v1348_v38  ;;  %1485 = vst [vmem:[#allocation6 + $0x88] sm:$0xff] (!%p1666_p4), %v1421_v33  ;;  %v1428_v15 = vmul.f32 (!%p1666_p4), %v2208_v61, %v1353_v49  ;;  %v1430_v4 = vmul.f32 (!%p1666_p4), %v2208_v61, %v1355_v52  ;;  %v1384_v52 = vld [vmem:[#allocation2 + $0x1b8] sm:$0xff] (!%p1666_p4) }
 0x394   : > { %1315 = vst [vmem:[#allocation2 + $0x1e0] sm:$0xff] %v1251_v35  ;;  %v1422_v35 = vmul.f32 (!%p1666_p4), %v2208_v61, %v1347_v37  ;;  %v1429_v62 = vmul.f32 (!%p1666_p4), %v2212_v7, %v1354_v50  ;;  %1504 = vst [vmem:[#allocation6 + $0x120] sm:$0xff] (!%p1666_p4), %v1440_v12  ;;  %v1449_v37 = vmul.f32 (!%p1666_p4), %v2212_v7, %v1374_v32  ;;  %v1382_v49 = vld [vmem:[#allocation2 + $0x1a8] sm:$0xff] (!%p1666_p4)  ;;  %v1383_v50 = vld [vmem:[#allocation2 + $0x1b0] sm:$0xff] (!%p1666_p4) }
 0x395   : > { %1316 = vst [vmem:[#allocation2 + $0x1e8] sm:$0xff] %v1252_v54  ;;  %v1186_v57 = vpop.f32.mrb[30].mxu1  ;;  %v1424_v54 = vmul.f32 (!%p1666_p4), %v2208_v61, %v1349_v40  ;;  %1487 = vst [vmem:[#allocation6 + $0x98] sm:$0xff] (!%p1666_p4), %v1423_v53  ;;  %v1450_v38 = vmul.f32 (!%p1666_p4), %v2208_v61, %v1375_v34  ;;  %v1376_v40 = vld [vmem:[#allocation2 + $0x178] sm:$0xff] (!%p1666_p4)  ;;  %v1456_v33 = vmul.f32 (!%p1666_p4), %v2208_v61, %v1381_v48 }
 0x396   : > { %v1253_v58 = vadd.f32 %v1186_v57, %v771_v55  ;;  %v1188_v11 = vpop.f32.mrb[31].mxu1  ;;  %v1425_v55 = vmul.f32 (!%p1666_p4), %v2212_v7, %v1350_v46  ;;  %v1357_v57 = vld [vmem:[#allocation2 + $0xe0] sm:$0xff] (!%p1666_p4)  ;;  %1486 = vst [vmem:[#allocation6 + $0x90] sm:$0xff] (!%p1666_p4), %v1422_v35  ;;  %1492 = vst [vmem:[#allocation6 + $0xc0] sm:$0xff] (!%p1666_p4), %v1428_v15  ;;  %v1451_v45 = vmul.f32 (!%p1666_p4), %v2212_v7, %v1376_v40 }
 0x397   : > { %v1254_v59 = vadd.f32 %v1188_v11, %v772_v56  ;;  %v1356_v56 = vld [vmem:[#allocation2 + $0xd8] sm:$0xff] (!%p1666_p4)  ;;  %v1426_v11 = vmul.f32 (!%p1666_p4), %v2208_v61, %v1351_v21  ;;  %1488 = vst [vmem:[#allocation6 + $0xa0] sm:$0xff] (!%p1666_p4), %v1424_v54  ;;  %v1432_v30 = vmul.f32 (!%p1666_p4), %v2208_v61, %v1357_v57  ;;  %1493 = vst [vmem:[#allocation6 + $0xc8] sm:$0xff] (!%p1666_p4), %v1429_v62  ;;  %v1379_v21 = vld [vmem:[#allocation2 + $0x190] sm:$0xff] (!%p1666_p4) }
 0x398   : > { %1317 = vst [vmem:[#allocation2 + $0x1f0] sm:$0xff] %v1253_v58  ;;  %v1358_v58 = vld [vmem:[#allocation2 + $0xe8] sm:$0xff] (!%p1666_p4)  ;;  %1489 = vst [vmem:[#allocation6 + $0xa8] sm:$0xff] (!%p1666_p4), %v1425_v55  ;;  %v1431_v39 = vmul.f32 (!%p1666_p4), %v2212_v7, %v1356_v56  ;;  %v1453_v46 = vmul.f32 (!%p1666_p4), %v2212_v7, %v1378_v44  ;;  %v1454_v20 = vmul.f32 (!%p1666_p4), %v2208_v61, %v1379_v21  ;;  %v1385_v55 = vld [vmem:[#allocation2 + $0x1c0] sm:$0xff] (!%p1666_p4) }
 0x399   : > { %1318 = vst [vmem:[#allocation2 + $0x1f8] sm:$0xff] %v1254_v59  ;;  %v1427_v59 = vmul.f32 (!%p1666_p4), %v2212_v7, %v1352_v27  ;;  %v1433_v5 = vmul.f32 (!%p1666_p4), %v2212_v7, %v1358_v58  ;;  %1490 = vst [vmem:[#allocation6 + $0xb0] sm:$0xff] (!%p1666_p4), %v1426_v11  ;;  %v1380_v27 = vld [vmem:[#allocation2 + $0x198] sm:$0xff] (!%p1666_p4)  ;;  %v1457_v35 = vmul.f32 (!%p1666_p4), %v2212_v7, %v1382_v49  ;;  %v1386_v56 = vld [vmem:[#allocation2 + $0x1c8] sm:$0xff] (!%p1666_p4) }
 0x39a   : > { %1494 = vst [vmem:[#allocation6 + $0xd0] sm:$0xff] %v1430_v4  ;;  %1495 = vst [vmem:[#allocation6 + $0xd8] sm:$0xff] %v1431_v39  ;;  %v1455_v17 = vmul.f32 %v2212_v7, %v1380_v27  ;;  %v1458_v53 = vmul.f32 %v2208_v61, %v1383_v50  ;;  %v1459_v54 = vmul.f32 %v2212_v7, %v1384_v52  ;;  %v1387_v57 = vld [vmem:[#allocation2 + $0x1d0] sm:$0xff]  ;;  %v1388_v15 = vld [vmem:[#allocation2 + $0x1d8] sm:$0xff] }
 0x39b   : > { %1491 = vst [vmem:[#allocation6 + $0xb8] sm:$0xff] %v1427_v59  ;;  %1496 = vst [vmem:[#allocation6 + $0xe0] sm:$0xff] %v1432_v30  ;;  %v1460_v58 = vmul.f32 %v2208_v61, %v1385_v55  ;;  %v1461_v11 = vmul.f32 %v2212_v7, %v1386_v56  ;;  %v1462_v59 = vmul.f32 %v2208_v61, %v1387_v57  ;;  %v1389_v62 = vld [vmem:[#allocation2 + $0x1e0] sm:$0xff] }
 0x39c   : > { %1497 = vst [vmem:[#allocation6 + $0xe8] sm:$0xff] %v1433_v5  ;;  %1505 = vst [vmem:[#allocation6 + $0x128] sm:$0xff] %v1441_v23  ;;  %v1390_v0 = vld [vmem:[#allocation2 + $0x1e8] sm:$0xff]  ;;  %v1463_v47 = vmul.f32 %v2212_v7, %v1388_v15  ;;  %v1464_v3 = vmul.f32 %v2208_v61, %v1389_v62 }
 0x39d   : > { %1506 = vst [vmem:[#allocation6 + $0x130] sm:$0xff] %v1442_v22  ;;  %1507 = vst [vmem:[#allocation6 + $0x138] sm:$0xff] %v1443_v63  ;;  %v1465_v4 = vmul.f32 %v2212_v7, %v1390_v0  ;;  %v1327_v5 = vld [vmem:[#allocation2 + $0x101] ss:$8 sm:$0x3] }
 0x39e   : > { %1508 = vst [vmem:[#allocation6 + $0x140] sm:$0xff] %v1444_v28  ;;  %1509 = vst [vmem:[#allocation6 + $0x148] sm:$0xff] %v1445_v60  ;;  %v1328_v8 = vmul.f32 %v1327_v5, %v2204_v1 }
 0x39f   : > { %1510 = vst [vmem:[#allocation6 + $0x150] sm:$0xff] %v1446_v29  ;;  %1511 = vst [vmem:[#allocation6 + $0x158] sm:$0xff] %v1447_v14  ;;  %v1391_v39 = vld [vmem:[#allocation2 + $0x1f0] sm:$0xff] }
 0x3a0   : > { %1512 = vst [vmem:[#allocation6 + $0x160] sm:$0xff] %v1448_v36  ;;  %1513 = vst [vmem:[#allocation6 + $0x168] sm:$0xff] %v1449_v37  ;;  %v1392_v30 = vld [vmem:[#allocation2 + $0x1f8] sm:$0xff]  ;;  %v1466_v6 = vmul.f32 %v2208_v61, %v1391_v39 }
 0x3a1   : > { %1514 = vst [vmem:[#allocation6 + $0x170] sm:$0xff] %v1450_v38  ;;  %1515 = vst [vmem:[#allocation6 + $0x178] sm:$0xff] %v1451_v45  ;;  %v1467_v18 = vmul.f32 %v2212_v7, %v1392_v30 }
 0x3a2   : > { %1516 = vst [vmem:[#allocation6 + $0x180] sm:$0xff] %v1452_v24  ;;  %1517 = vst [vmem:[#allocation6 + $0x188] sm:$0xff] %v1453_v46 }
 0x3a3   : > { %1518 = vst [vmem:[#allocation6 + $0x190] sm:$0xff] %v1454_v20  ;;  %1519 = vst [vmem:[#allocation6 + $0x198] sm:$0xff] %v1455_v17 }
 0x3a4   : > { %1520 = vst [vmem:[#allocation6 + $0x1a0] sm:$0xff] %v1456_v33  ;;  %1521 = vst [vmem:[#allocation6 + $0x1a8] sm:$0xff] %v1457_v35 }
 0x3a5   : > { %1522 = vst [vmem:[#allocation6 + $0x1b0] sm:$0xff] %v1458_v53  ;;  %1523 = vst [vmem:[#allocation6 + $0x1b8] sm:$0xff] %v1459_v54 }
 0x3a6   : > { %1524 = vst [vmem:[#allocation6 + $0x1c0] sm:$0xff] %v1460_v58  ;;  %1525 = vst [vmem:[#allocation6 + $0x1c8] sm:$0xff] %v1461_v11 }
 0x3a7   : > { %1526 = vst [vmem:[#allocation6 + $0x1d0] sm:$0xff] %v1462_v59  ;;  %1527 = vst [vmem:[#allocation6 + $0x1d8] sm:$0xff] %v1463_v47 }
 0x3a8   : > { %1528 = vst [vmem:[#allocation6 + $0x1e0] sm:$0xff] %v1464_v3  ;;  %1529 = vst [vmem:[#allocation6 + $0x1e8] sm:$0xff] %v1465_v4 }
 0x3a9   : > { %1530 = vst [vmem:[#allocation6 + $0x1f0] sm:$0xff] %v1466_v6  ;;  %1531 = vst [vmem:[#allocation6 + $0x1f8] sm:$0xff] %v1467_v18 }
 0x3aa   : > { %1541 = vst.msk [vmem:[#allocation7] ss:$8 sm:$0x3] %vm2215_vm1, %v1328_v8 }
 0x3ab PF: > { %p1715_p6 = scmp.eq.s32.totalorder %s1910_s19, 3  ;;  %s1870_s22 = smov [#allocation6]  }
 0x3ac   : > { %s1549_s23 = sshll.u32 %s1870_s22, 4  ;;  %s1550_s23 = int_to_ptr.vmem [resolvable:$true] %s1549_s23 }
 0x3ad   : > { %s1791_s24 = scalar_lea.vmem %s1550_s23, 8192  ;;  %p1798_p13 = scmp.lt.s32.totalorder %s1550_s23, %s1550_s23 }
 0x3ae   : > { %p1792_p10 = scmp.ne.s32.totalorder %s1550_s23, %s1791_s24  ;;  %p1799_p0 = scmp.lt.s32.totalorder %s1791_s24, %s1791_s24 }
 0x3b0   : > { %p1793_p11 = pnand %p1792_p10, %p1715_p6  ;;  %p1800_p1 = por %p1799_p0, %p1798_p13 }
 0x3b2   : > { %p1794_p12 = pneg %p1793_p11 }
 0x3b4   : > { %p1801_p5 = pnand %p1800_p1, %p1794_p12 }
 0x3b6   : > { %1804 = shalt.err (!%p1801_p5)
}
 0x3b7   : > { %s1805_s27 = scalar_lea.hbm %s2340_s4, 8192 }
 0x3b8   : > { %p1806_p7 = scmp.ne.s32.totalorder %s2340_s4, %s1805_s27  ;;  %p1811_p2 = scmp.lt.u32.totalorder %s1805_s27, %s2340_s4 }
 0x3ba   : > { %p1807_p9 = pnand %p1806_p7, %p1715_p6 }
 0x3bc   : > { %p1808_p8 = pneg %p1807_p9 }
 0x3be   : > { %p1813_p3 = pnand %p1811_p2, %p1808_p8 }
 0x3c0   : > { %1816 = shalt.err (!%p1813_p3)
}
 0x3c1   : > { %s1871_s7 = smov 256   ;;  %s1872_s8 = smov 16  }
 0x3c2   : > { %1702 = dma.vmem_to_hbm [thread:$0]  (%p1715_p6), %s1550_s23, 8192, %s2340_s4, [#allocation5], %s1871_s7, %s1871_s7, %s1872_s8  }
 0x3c3   : > { %s1873_s11 = smov [#allocation7]  }
 0x3c4   : > { %s1563_s12 = sshll.u32 %s1873_s11, 4  ;;  %s1564_s12 = int_to_ptr.vmem [resolvable:$true] %s1563_s12 }
 0x3c5   : > { %s1817_s13 = scalar_lea.vmem %s1564_s12, 256  ;;  %p1824_p12 = scmp.lt.s32.totalorder %s1564_s12, %s1564_s12 }
 0x3c6   : > { %p1818_p4 = scmp.ne.s32.totalorder %s1564_s12, %s1817_s13  ;;  %p1825_p13 = scmp.lt.s32.totalorder %s1817_s13, %s1817_s13 }
 0x3c8   : > { %p1819_p10 = pnand %p1818_p4, %p1715_p6  ;;  %p1826_p0 = por %p1825_p13, %p1824_p12 }
 0x3ca   : > { %p1820_p11 = pneg %p1819_p10 }
 0x3cc   : > { %p1827_p1 = pnand %p1826_p0, %p1820_p11 }
 0x3ce   : > { %1830 = shalt.err (!%p1827_p1)
}
 0x3cf   : > { %s1831_s16 = scalar_lea.hbm %s2341_s5, 256 }
 0x3d0   : > { %p1832_p5 = scmp.ne.s32.totalorder %s2341_s5, %s1831_s16  ;;  %p1837_p8 = scmp.lt.u32.totalorder %s1831_s16, %s2341_s5 }
 0x3d2   : > { %p1833_p7 = pnand %p1832_p5, %p1715_p6 }
 0x3d4   : > { %p1834_p9 = pneg %p1833_p7 }
 0x3d6   : > { %p1839_p2 = pnand %p1837_p8, %p1834_p9 }
 0x3d8   : > { %1842 = shalt.err (!%p1839_p2)
}
 0x3d9   : > { %1704 = dma.vmem_to_hbm [thread:$0]  (%p1715_p6), %s1564_s12, 256, %s2341_s5, [#allocation8]  }
 0x3da   : > { %1852 = dma.done.wait (%p1715_p6), [#allocation5], 8192  }
 0x3db   : > { %1854 = vsyncadd (%p1715_p6), [#allocation5], 4294959104 }
 0x3dc   : > { %1856 = dma.done.wait (%p1715_p6), [#allocation8], 256  }
 0x3dd   : > { %1858 = vsyncadd (%p1715_p6), [#allocation8], 4294967040 }
 0x3de PF: > { %s19_s18 = sadd.s32 1, %s1861_s18  }
 0x3df   : > { %p16_p3 = scmp.ge.s32.totalorder %s19_s18, 6  }
 0x3e1   :  { %18 = sbr.rel (!%p16_p3) target bundleno = 3 (0x3), region = 87 }
 0x3e8   :  { %1580 = vsyncpa [#allocation4], 1 }
 0x3e9   :  { %1582 = vsyncpa [#allocation4 + $0x1], 1 }
 0x3ea   :  { %1583 = vsyncpa [#allocation5], 1 }
 0x3eb   :  { %1585 = vsyncpa [#allocation5 + $0x1], 1 }
 0x3ec   :  { %1586 = vsyncpa [#allocation8], 1 }

</bundles_post_ra>
